<compile_context>
chip_gen: v5e
topology: v5e:2x2
jax: 0.10.0
libtpu: 0.0.40
codegen_flags: <defaults>
</compile_context>

<pallas_src>
import jax
import jax.numpy as jnp
from jax.experimental import pallas as pl
from jax.experimental.pallas import tpu as pltpu

# ---- model dims (img_shape = (channels, img_size, img_size)) ----
CHANNELS = 4
IMG_SIZE = 16
IN_DIM = CHANNELS * IMG_SIZE * IMG_SIZE   # prod(img_shape) = 1024
H1 = 512
H2 = 256
OUT = 1

MAX_BATCH_TILE = 1024   # ~10 MiB VMEM/tile: fits v5e 16 MiB scoped, v6e/v7x easily
ROW_ALIGN = 16          # bf16 sublane packing: keep tiles a multiple of 16 rows


def _leaky_relu(x, slope=0.2):
    return jnp.where(x > 0, x, slope * x)


def _cdiv(a, b):
    return (a + b - 1) // b


def _round_up(x, m):
    return ((x + m - 1) // m) * m


def _choose_tiling(b):
    """Pick (tile_rows, padded_batch).

    cdiv-based split bounds padding to < ROW_ALIGN rows per tile (the old
    round_up(b, tb) logic could waste up to ~2x on awkward batch sizes), and
    we force >= 2 grid steps whenever the batch is splittable so v7x can shard
    the 'parallel' batch axis across its two TensorCores.
    """
    n_tiles = _cdiv(b, MAX_BATCH_TILE)
    if n_tiles == 1 and b >= 2 * ROW_ALIGN:
        n_tiles = 2
    tb = _round_up(_cdiv(b, n_tiles), ROW_ALIGN)
    return tb, n_tiles * tb


def discriminator_kernel(x_ref, w1_ref, b1_ref, w2_ref, b2_ref, w3_ref, b3_ref,
                         o_ref):
    """One batch tile of the discriminator MLP.

    x_ref  : [TB, IN_DIM]  bf16 flattened images (current batch tile)
    w1_ref : [IN_DIM, 512] bf16   b1_ref : [1, 512] f32
    w2_ref : [512, 256]    bf16   b2_ref : [1, 256] f32
    w3_ref : [1, 256]      f32    b3_ref : [1, 1]   f32
    o_ref  : [TB, 1]       f32 validity score
    """
    x = x_ref[...]                                               # bf16
    # Linear(IN_DIM, 512) + LeakyReLU(0.2)   (bf16 MXU, f32 accumulate)
    h1 = jnp.dot(x, w1_ref[...], preferred_element_type=jnp.float32)
    h1 = _leaky_relu(h1 + b1_ref[...])
    # Linear(512, 256) + LeakyReLU(0.2)
    h2 = jnp.dot(h1.astype(jnp.bfloat16), w2_ref[...],
                 preferred_element_type=jnp.float32)
    h2 = _leaky_relu(h2 + b2_ref[...])
    # Linear(256, 1): elementwise mul + lane reduce (VPU/XLU), not an N=1 MXU op.
    o = jnp.sum(h2 * w3_ref[...], axis=-1, keepdims=True) + b3_ref[...]
    o_ref[...] = o.astype(o_ref.dtype)


def prepare_params(params):
    """One-time param preprocessing (hoisted out of the per-call forward):
    cast the large matmul weights to bf16 and lay w3 out as a [1, 256] row.
    Biases and the final layer stay f32."""
    w1, b1, w2, b2, w3, b3 = params
    return (
        w1.astype(jnp.bfloat16),            # [IN_DIM, 512] bf16
        b1.astype(jnp.float32),             # [1, 512]
        w2.astype(jnp.bfloat16),            # [512, 256]   bf16
        b2.astype(jnp.float32),             # [1, 256]
        w3.reshape(1, H2).astype(jnp.float32),  # [1, 256]
        b3.astype(jnp.float32),             # [1, 1]
    )


@jax.jit
def discriminator_forward(img, prepared_params):
    """img: [B, C, H, W] float32 -> validity [B, 1] float32.

    jit'ed so the flatten + pad + bf16 cast fuse into one HBM pass feeding the
    pallas_call (unjitted these were 2-3 separate full passes over the batch).
    """
    b = img.shape[0]
    w1b, b1, w2b, b2, w3_row, b3 = prepared_params

    # Matches torch's img.view(img.shape[0], -1): row-major flatten of (C, H, W).
    img_flat = img.reshape(b, -1).astype(jnp.float32)

    # Batch tile / padding (padding bounded to < ROW_ALIGN rows per tile).
    tb, b_pad = _choose_tiling(b)
    if b_pad != b:
        img_flat = jnp.pad(img_flat, ((0, b_pad - b), (0, 0)))
    x = img_flat.astype(jnp.bfloat16)

    grid = (b_pad // tb,)

    def resident(shape):
        # Same block every grid step -> stays VMEM-resident across iterations.
        return pl.BlockSpec(shape, lambda i: tuple(0 for _ in shape))

    out = pl.pallas_call(
        discriminator_kernel,
        out_shape=jax.ShapeDtypeStruct((b_pad, OUT), jnp.float32),
        grid=grid,
        in_specs=[
            pl.BlockSpec((tb, IN_DIM), lambda i: (i, 0)),   # x: tiled over batch
            resident(w1b.shape), resident(b1.shape),
            resident(w2b.shape), resident(b2.shape),
            resident(w3_row.shape), resident(b3.shape),
        ],
        out_specs=pl.BlockSpec((tb, OUT), lambda i: (i, 0)),
        compiler_params=pltpu.CompilerParams(
            dimension_semantics=("parallel",)),              # v7x: 2 TCs
    )(x, w1b, b1, w2b, b2, w3_row, b3)
    return out[:b]


def init_params(key):
    """Deterministic init mimicking torch.nn.Linear default:
    U(-1/sqrt(fan_in), 1/sqrt(fan_in)). Weights stored as [in, out]."""
    def linear(k, fan_in, fan_out):
        kw, kb = jax.random.split(k)
        bound = 1.0 / jnp.sqrt(jnp.float32(fan_in))
        w = jax.random.uniform(kw, (fan_in, fan_out), jnp.float32, -bound, bound)
        bb = jax.random.uniform(kb, (1, fan_out), jnp.float32, -bound, bound)
        return w, bb

    k1, k2, k3 = jax.random.split(key, 3)
    w1, b1 = linear(k1, IN_DIM, H1)
    w2, b2 = linear(k2, H1, H2)
    w3, b3 = linear(k3, H2, OUT)
    return (w1, b1, w2, b2, w3, b3)


def reference_forward_f32(img, params):
    """Pure-JAX f32 reference of the PyTorch forward (semantic spec)."""
    w1, b1, w2, b2, w3, b3 = params
    x = img.reshape(img.shape[0], -1)
    h1 = _leaky_relu(x @ w1 + b1)
    h2 = _leaky_relu(h1 @ w2 + b2)
    return h2 @ w3 + b3


def reference_forward_matched(img, params):
    """Reference with the same bf16-operand / f32-accumulate precision as the kernel."""
    w1, b1, w2, b2, w3, b3 = params
    x = img.reshape(img.shape[0], -1).astype(jnp.bfloat16)
    h1 = jnp.dot(x, w1.astype(jnp.bfloat16),
                 preferred_element_type=jnp.float32)
    h1 = _leaky_relu(h1 + b1)
    h2 = jnp.dot(h1.astype(jnp.bfloat16), w2.astype(jnp.bfloat16),
                 preferred_element_type=jnp.float32)
    h2 = _leaky_relu(h2 + b2)
    return h2 @ w3 + b3


if __name__ == "__main__":
    key = jax.random.PRNGKey(0)
    kp, kx = jax.random.split(key)
    params = init_params(kp)
    prepared = jax.block_until_ready(prepare_params(params))  # one-time cast

    batch = 2
    img = jax.random.normal(kx, (batch, CHANNELS, IMG_SIZE, IMG_SIZE),
                            dtype=jnp.float32)

    out = jax.block_until_ready(discriminator_forward(img, prepared))

    ref_matched = reference_forward_matched(img, params)
    ref_f32 = reference_forward_f32(img, params)

    assert out.shape == (batch, 1), out.shape
    # Exact-precision check against a bf16/f32-matched reference.
    assert jnp.allclose(out, ref_matched, atol=2e-3, rtol=2e-3), (out, ref_matched)
    # Loose sanity check against the pure-f32 PyTorch-equivalent math.
    assert jnp.allclose(out, ref_f32, atol=5e-2, rtol=5e-2), (out, ref_f32)

    print("KERNEL_OK")
</pallas_src>

<mosaic_0001>
module attributes {stable_mosaic.version = 11 : i64} {
  func.func @discriminator_kernel(%arg0: i32, %arg1: memref<16x1024xbf16, #tpu.memory_space<vmem>>, %arg2: memref<1024x512xbf16, #tpu.memory_space<vmem>>, %arg3: memref<1x512xf32, #tpu.memory_space<vmem>>, %arg4: memref<512x256xbf16, #tpu.memory_space<vmem>>, %arg5: memref<1x256xf32, #tpu.memory_space<vmem>>, %arg6: memref<1x256xf32, #tpu.memory_space<vmem>>, %arg7: memref<1x1xf32, #tpu.memory_space<vmem>>, %arg8: memref<16x1xf32, #tpu.memory_space<vmem>>) attributes {dimension_semantics = [#tpu.dimension_semantics<parallel>], iteration_bounds = array<i64: 1>, scalar_prefetch = 0 : i64, scratch_operands = 0 : i64, tpu.core_type = #tpu.core_type<tc>, window_params = [{transform_indices = @transform_0, window_bounds = array<i64: 16, 1024>}, {pipeline_mode = #tpu.pipeline_mode<synchronous>, transform_indices = @transform_1, window_bounds = array<i64: 1024, 512>}, {pipeline_mode = #tpu.pipeline_mode<synchronous>, transform_indices = @transform_2, window_bounds = array<i64: 1, 512>}, {pipeline_mode = #tpu.pipeline_mode<synchronous>, transform_indices = @transform_3, window_bounds = array<i64: 512, 256>}, {pipeline_mode = #tpu.pipeline_mode<synchronous>, transform_indices = @transform_4, window_bounds = array<i64: 1, 256>}, {pipeline_mode = #tpu.pipeline_mode<synchronous>, transform_indices = @transform_5, window_bounds = array<i64: 1, 256>}, {pipeline_mode = #tpu.pipeline_mode<synchronous>, transform_indices = @transform_6, window_bounds = array<i64: 1, 1>}, {transform_indices = @transform_7, window_bounds = array<i64: 16, 1>}]} {
    %c0 = arith.constant 0 : index
    %c0_0 = arith.constant 0 : index
    %0 = vector.load %arg1[%c0, %c0_0] : memref<16x1024xbf16, #tpu.memory_space<vmem>>, vector<16x1024xbf16>
    %c0_1 = arith.constant 0 : index
    %c0_2 = arith.constant 0 : index
    %1 = vector.load %arg2[%c0_1, %c0_2] : memref<1024x512xbf16, #tpu.memory_space<vmem>>, vector<1024x512xbf16>
    %cst = arith.constant dense<0.000000e+00> : vector<16x512xf32>
    %2 = tpu.matmul %0, %1, %cst {dimension_numbers = #tpu.dot_dimension_numbers<[1], [0], [0], [1], [0, 0, 1, 1], [], []>} : vector<16x1024xbf16>, vector<1024x512xbf16>, vector<16x512xf32> -> vector<16x512xf32>
    %c0_3 = arith.constant 0 : index
    %c0_4 = arith.constant 0 : index
    %3 = vector.load %arg3[%c0_3, %c0_4] : memref<1x512xf32, #tpu.memory_space<vmem>>, vector<1x512xf32>
    %4 = vector.broadcast %3 : vector<1x512xf32> to vector<16x512xf32>
    %5 = arith.addf %2, %4 : vector<16x512xf32>
    %cst_5 = arith.constant 0.000000e+00 : f32
    %6 = vector.broadcast %cst_5 : f32 to vector<16x512xf32>
    %7 = arith.cmpf ogt, %5, %6 : vector<16x512xf32>
    %cst_6 = arith.constant 2.000000e-01 : f32
    %8 = vector.broadcast %cst_6 : f32 to vector<16x512xf32>
    %9 = arith.mulf %8, %5 : vector<16x512xf32>
    %10 = arith.select %7, %5, %9 : vector<16x512xi1>, vector<16x512xf32>
    %11 = arith.truncf %10 : vector<16x512xf32> to vector<16x512xbf16>
    %c0_7 = arith.constant 0 : index
    %c0_8 = arith.constant 0 : index
    %12 = vector.load %arg4[%c0_7, %c0_8] : memref<512x256xbf16, #tpu.memory_space<vmem>>, vector<512x256xbf16>
    %cst_9 = arith.constant dense<0.000000e+00> : vector<16x256xf32>
    %13 = tpu.matmul %11, %12, %cst_9 {dimension_numbers = #tpu.dot_dimension_numbers<[1], [0], [0], [1], [0, 0, 1, 1], [], []>} : vector<16x512xbf16>, vector<512x256xbf16>, vector<16x256xf32> -> vector<16x256xf32>
    %c0_10 = arith.constant 0 : index
    %c0_11 = arith.constant 0 : index
    %14 = vector.load %arg5[%c0_10, %c0_11] : memref<1x256xf32, #tpu.memory_space<vmem>>, vector<1x256xf32>
    %15 = vector.broadcast %14 : vector<1x256xf32> to vector<16x256xf32>
    %16 = arith.addf %13, %15 : vector<16x256xf32>
    %cst_12 = arith.constant 0.000000e+00 : f32
    %17 = vector.broadcast %cst_12 : f32 to vector<16x256xf32>
    %18 = arith.cmpf ogt, %16, %17 : vector<16x256xf32>
    %cst_13 = arith.constant 2.000000e-01 : f32
    %19 = vector.broadcast %cst_13 : f32 to vector<16x256xf32>
    %20 = arith.mulf %19, %16 : vector<16x256xf32>
    %21 = arith.select %18, %16, %20 : vector<16x256xi1>, vector<16x256xf32>
    %c0_14 = arith.constant 0 : index
    %c0_15 = arith.constant 0 : index
    %22 = vector.load %arg6[%c0_14, %c0_15] : memref<1x256xf32, #tpu.memory_space<vmem>>, vector<1x256xf32>
    %23 = vector.broadcast %22 : vector<1x256xf32> to vector<16x256xf32>
    %24 = arith.mulf %21, %23 : vector<16x256xf32>
    %cst_16 = arith.constant dense<0.000000e+00> : vector<16xf32>
    %25 = vector.multi_reduction <add>, %24, %cst_16 [1] : vector<16x256xf32> to vector<16xf32>
    %26 = vector.shape_cast %25 : vector<16xf32> to vector<16x1xf32>
    %c0_17 = arith.constant 0 : index
    %c0_18 = arith.constant 0 : index
    %27 = vector.load %arg7[%c0_17, %c0_18] : memref<1x1xf32, #tpu.memory_space<vmem>>, vector<1x1xf32>
    %28 = vector.broadcast %27 : vector<1x1xf32> to vector<16x1xf32>
    %29 = arith.addf %26, %28 : vector<16x1xf32>
    %c0_19 = arith.constant 0 : index
    %c0_20 = arith.constant 0 : index
    %30 = vector.load %arg8[%c0_19, %c0_20] : memref<16x1xf32, #tpu.memory_space<vmem>>, vector<16x1xf32>
    tpu.vector_store %arg8[%c0_19, %c0_20], %29 {strides = array<i32>} : memref<16x1xf32, #tpu.memory_space<vmem>>, vector<16x1xf32>,
    return
  }
  func.func @transform_0(%arg0: i32) -> (i32, i32) {
    %c0_i32 = arith.constant 0 : i32
    %c0_i32_0 = arith.constant 0 : i32
    return %arg0, %c0_i32 : i32, i32
  }
  func.func @transform_1(%arg0: i32) -> (i32, i32) {
    %c0_i32 = arith.constant 0 : i32
    %c0_i32_0 = arith.constant 0 : i32
    %c0_i32_1 = arith.constant 0 : i32
    return %c0_i32, %c0_i32_0 : i32, i32
  }
  func.func @transform_2(%arg0: i32) -> (i32, i32) {
    %c0_i32 = arith.constant 0 : i32
    %c0_i32_0 = arith.constant 0 : i32
    %c0_i32_1 = arith.constant 0 : i32
    return %c0_i32, %c0_i32_0 : i32, i32
  }
  func.func @transform_3(%arg0: i32) -> (i32, i32) {
    %c0_i32 = arith.constant 0 : i32
    %c0_i32_0 = arith.constant 0 : i32
    %c0_i32_1 = arith.constant 0 : i32
    return %c0_i32, %c0_i32_0 : i32, i32
  }
  func.func @transform_4(%arg0: i32) -> (i32, i32) {
    %c0_i32 = arith.constant 0 : i32
    %c0_i32_0 = arith.constant 0 : i32
    %c0_i32_1 = arith.constant 0 : i32
    return %c0_i32, %c0_i32_0 : i32, i32
  }
  func.func @transform_5(%arg0: i32) -> (i32, i32) {
    %c0_i32 = arith.constant 0 : i32
    %c0_i32_0 = arith.constant 0 : i32
    %c0_i32_1 = arith.constant 0 : i32
    return %c0_i32, %c0_i32_0 : i32, i32
  }
  func.func @transform_6(%arg0: i32) -> (i32, i32) {
    %c0_i32 = arith.constant 0 : i32
    %c0_i32_0 = arith.constant 0 : i32
    %c0_i32_1 = arith.constant 0 : i32
    return %c0_i32, %c0_i32_0 : i32, i32
  }
  func.func @transform_7(%arg0: i32) -> (i32, i32) {
    %c0_i32 = arith.constant 0 : i32
    %c0_i32_0 = arith.constant 0 : i32
    return %arg0, %c0_i32 : i32, i32
  }
}

</mosaic_0001>

<bundles_post_ra>
// kernel: discriminator_forward.1
= control target key start
LH: loop header
LB: loop body
LE: loop exit
PB: predicated region body
PF: predicated region fallthrough
CT: control target
= control target key end

     0   :  { %s4604_s0 = inlined_call_operand.vmem [shape: bf16[16,1024], index: 0, kind: input, shape index: {}]   ;;  %s4605_s1 = inlined_call_operand.hbm [shape: bf16[1024,512], index: 1, kind: input, shape index: {}]   ;;  %s4606_s2 = inlined_call_operand.vmem [shape: f32[1,512], index: 2, kind: input, shape index: {}]   ;;  %s4607_s3 = inlined_call_operand.hbm [shape: bf16[512,256], index: 3, kind: input, shape index: {}]   ;;  %s4608_s4 = inlined_call_operand.vmem [shape: f32[1,256], index: 4, kind: input, shape index: {}]   ;;  %s4609_s5 = inlined_call_operand.vmem [shape: f32[1,256], index: 5, kind: input, shape index: {}]   ;;  %s4610_s6 = inlined_call_operand.<no memory space> [shape: f32[1,1], index: 6, kind: input, shape index: {}]   ;;  %s4611_s7 = inlined_call_operand.vmem [shape: f32[16,1], index: 7, kind: output, shape index: {}]  }
   0x1   :  { %v12_v0 = vstv %s4610_s6 }
   0x2   :  { %13 = vst [vmem:[#allocation2] sm:$0x1] %v12_v0 }
   0x3   :  { %14 = vsyncpa [#allocation4], 0  ;;  %s22_s28 = sshll.u32 %s4605_s1, 4  ;;  %s23_s28 = int_to_ptr.hbm [resolvable:$true] %s22_s28 }
   0x4   :  { %15 = vsyncpa [#allocation6], 0  ;;  %s4374_s29 = smov [#allocation3]   ;;  %s37_s10 = sshll.u32 %s4607_s3, 4  ;;  %s38_s10 = int_to_ptr.hbm [resolvable:$true] %s37_s10 }
   0x5   :  { %s24_s30 = sshll.u32 %s4374_s29, 4  ;;  %s4375_s11 = smov 256   ;;  %s25_s30 = int_to_ptr.vmem [resolvable:$true] %s24_s30 }
   0x6   :  { %s4376_s12 = smov 16   ;;  %s4377_s6 = smov [#allocation5]  }
   0x7   :  { %30 = dma.hbm_to_vmem [thread:$0]  %s23_s28, 32768, %s25_s30, [#allocation4], %s4375_s11, %s4375_s11, %s4376_s12  }
   0x8   :  { %s39_s13 = sshll.u32 %s4377_s6, 4  ;;  %s4378_s14 = smov 128   ;;  %s40_s13 = int_to_ptr.vmem [resolvable:$true] %s39_s13 }
   0x9   :  { %s4379_s15 = smov 8  }
   0xa   :  { %45 = dma.hbm_to_vmem [thread:$0]  %s38_s10, 8192, %s40_s13, [#allocation6], %s4378_s14, %s4378_s14, %s4379_s15  }
   0xb   :  { %4370 = dma.done.wait [#allocation4], 32768  }
   0xc   :  { %4371 = vsyncadd [#allocation4], 4294934528 }
   0xd   :  { %4372 = dma.done.wait [#allocation6], 8192  }
   0xe   :  { %4373 = vsyncadd [#allocation6], 4294959104  ;;  %v2821_v1 = vld [vmem:[#allocation3 + $0xe0] sm:$0xf]  ;;  %v4025_v2 = vld [vmem:[#allocation3 + $0xec] sm:$0xf0] }
   0xf   :  { %v2949_v3 = vld [vmem:[#allocation3 + $0x1e0] sm:$0xf]  ;;  %v2822_v4 = vor.u32 %v4025_v2, %v2821_v1  ;;  %v4057_v5 = vld [vmem:[#allocation3 + $0x1ec] sm:$0xf0]  ;;  %vm2666_vm12 = vcmask 7168  }
  0x10   :  { %v3077_v6 = vld [vmem:[#allocation3 + $0x2e0] sm:$0xf]  ;;  %v4089_v7 = vld [vmem:[#allocation3 + $0x2ec] sm:$0xf0]  ;;  %v2950_v8 = vor.u32 %v4057_v5, %v2949_v3 }
  0x11   :  { %v3078_v9 = vor.u32 %v4089_v7, %v3077_v6  ;;  %v3205_v10 = vld [vmem:[#allocation3 + $0x3e0] sm:$0xf]  ;;  %v4121_v11 = vld [vmem:[#allocation3 + $0x3ec] sm:$0xf0]  ;;  %1654 = vmatpush.bf16.msra.mxu0 %v2822_v4 }
  0x12   :  { %v2805_v12 = vld [vmem:[#allocation3 + $0xc0] sm:$0xf]  ;;  %v3206_v13 = vor.u32 %v4121_v11, %v3205_v10  ;;  %v4021_v14 = vld [vmem:[#allocation3 + $0xcc] sm:$0xf0]  ;;  %1668 = vmatpush.bf16.msra.mxu1 %v2950_v8 }
  0x13   :  { %v2933_v15 = vld [vmem:[#allocation3 + $0x1c0] sm:$0xf]  ;;  %v4053_v16 = vld [vmem:[#allocation3 + $0x1cc] sm:$0xf0]  ;;  %1682 = vmatpush.bf16.msra.mxu2 %v3078_v9  ;;  %v2806_v17 = vor.u32 %v4021_v14, %v2805_v12 }
  0x14   :  { %v2934_v18 = vor.u32 %v4053_v16, %v2933_v15  ;;  %v3061_v19 = vld [vmem:[#allocation3 + $0x2c0] sm:$0xf]  ;;  %v4085_v20 = vld [vmem:[#allocation3 + $0x2cc] sm:$0xf0]  ;;  %1696 = vmatpush.bf16.msra.mxu3 %v3206_v13 }
  0x15   :  { %v3189_v21 = vld [vmem:[#allocation3 + $0x3c0] sm:$0xf]  ;;  %v3062_v22 = vor.u32 %v4085_v20, %v3061_v19  ;;  %v4117_v23 = vld [vmem:[#allocation3 + $0x3cc] sm:$0xf0]  ;;  %1655 = vmatpush.bf16.msra.mxu0 %v2806_v17 }
  0x16   :  { %v2789_v24 = vld [vmem:[#allocation3 + $0xa0] sm:$0xf]  ;;  %v4017_v25 = vld [vmem:[#allocation3 + $0xac] sm:$0xf0]  ;;  %v3190_v26 = vor.u32 %v4117_v23, %v3189_v21  ;;  %1669 = vmatpush.bf16.msra.mxu1 %v2934_v18 }
  0x17   :  { %v2917_v27 = vld [vmem:[#allocation3 + $0x1a0] sm:$0xf]  ;;  %v4049_v28 = vld [vmem:[#allocation3 + $0x1ac] sm:$0xf0]  ;;  %v2790_v30 = vor.u32 %v4017_v25, %v2789_v24  ;;  %1683 = vmatpush.bf16.msra.mxu2 %v3062_v22 }
  0x18   :  { %v3045_v29 = vld [vmem:[#allocation3 + $0x2a0] sm:$0xf]  ;;  %v4081_v31 = vld [vmem:[#allocation3 + $0x2ac] sm:$0xf0]  ;;  %v2918_v34 = vor.u32 %v4049_v28, %v2917_v27  ;;  %1697 = vmatpush.bf16.msra.mxu3 %v3190_v26 }
  0x19   :  { %v3173_v32 = vld [vmem:[#allocation3 + $0x3a0] sm:$0xf]  ;;  %v4113_v33 = vld [vmem:[#allocation3 + $0x3ac] sm:$0xf0]  ;;  %v3046_v35 = vor.u32 %v4081_v31, %v3045_v29  ;;  %1656 = vmatpush.bf16.msra.mxu0 %v2790_v30 }
  0x1a   :  { %v2773_v36 = vld [vmem:[#allocation3 + $0x80] sm:$0xf]  ;;  %v4013_v37 = vld [vmem:[#allocation3 + $0x8c] sm:$0xf0]  ;;  %v3174_v39 = vor.u32 %v4113_v33, %v3173_v32  ;;  %1670 = vmatpush.bf16.msra.mxu1 %v2918_v34 }
  0x1b   :  { %v2901_v38 = vld [vmem:[#allocation3 + $0x180] sm:$0xf]  ;;  %v4045_v40 = vld [vmem:[#allocation3 + $0x18c] sm:$0xf0]  ;;  %v2774_v45 = vor.u32 %v4013_v37, %v2773_v36  ;;  %1684 = vmatpush.bf16.msra.mxu2 %v3046_v35 }
  0x1c   :  { %v3029_v41 = vld [vmem:[#allocation3 + $0x280] sm:$0xf]  ;;  %v4077_v42 = vld [vmem:[#allocation3 + $0x28c] sm:$0xf0]  ;;  %v2902_v46 = vor.u32 %v4045_v40, %v2901_v38  ;;  %1698 = vmatpush.bf16.msra.mxu3 %v3174_v39 }
  0x1d   :  { %v3157_v43 = vld [vmem:[#allocation3 + $0x380] sm:$0xf]  ;;  %v4109_v44 = vld [vmem:[#allocation3 + $0x38c] sm:$0xf0]  ;;  %v3030_v47 = vor.u32 %v4077_v42, %v3029_v41  ;;  %1657 = vmatpush.bf16.msra.mxu0 %v2774_v45 }
  0x1e   :  { %v2757_v48 = vld [vmem:[#allocation3 + $0x60] sm:$0xf]  ;;  %v4009_v49 = vld [vmem:[#allocation3 + $0x6c] sm:$0xf0]  ;;  %v3158_v51 = vor.u32 %v4109_v44, %v3157_v43  ;;  %1671 = vmatpush.bf16.msra.mxu1 %v2902_v46 }
  0x1f   :  { %v2885_v50 = vld [vmem:[#allocation3 + $0x160] sm:$0xf]  ;;  %v4041_v52 = vld [vmem:[#allocation3 + $0x16c] sm:$0xf0]  ;;  %v2758_v57 = vor.u32 %v4009_v49, %v2757_v48  ;;  %1685 = vmatpush.bf16.msra.mxu2 %v3030_v47 }
  0x20   :  { %v3013_v53 = vld [vmem:[#allocation3 + $0x260] sm:$0xf]  ;;  %v4073_v54 = vld [vmem:[#allocation3 + $0x26c] sm:$0xf0]  ;;  %v2886_v58 = vor.u32 %v4041_v52, %v2885_v50  ;;  %1699 = vmatpush.bf16.msra.mxu3 %v3158_v51 }
  0x21   :  { %v3141_v55 = vld [vmem:[#allocation3 + $0x360] sm:$0xf]  ;;  %v4105_v56 = vld [vmem:[#allocation3 + $0x36c] sm:$0xf0]  ;;  %v3014_v59 = vor.u32 %v4073_v54, %v3013_v53  ;;  %1658 = vmatpush.bf16.msra.mxu0 %v2758_v57 }
  0x22   :  { %v2741_v60 = vld [vmem:[#allocation3 + $0x40] sm:$0xf]  ;;  %v4005_v61 = vld [vmem:[#allocation3 + $0x4c] sm:$0xf0]  ;;  %v3142_v63 = vor.u32 %v4105_v56, %v3141_v55  ;;  %1672 = vmatpush.bf16.msra.mxu1 %v2886_v58  ;;  %v2685_v55 = vld [vmem:[%s4604_s0 + $0x8] sm:$0xf] }
  0x23   :  { %v2869_v62 = vld [vmem:[#allocation3 + $0x140] sm:$0xf]  ;;  %v4037_v0 = vld [vmem:[#allocation3 + $0x14c] sm:$0xf0]  ;;  %v2742_v5 = vor.u32 %v4005_v61, %v2741_v60  ;;  %1686 = vmatpush.bf16.msra.mxu2 %v3014_v59  ;;  %v3992_v60 = vld [vmem:[%s4604_s0 + $0x24] sm:$0xf0] }
  0x24   :  { %v2997_v1 = vld [vmem:[#allocation3 + $0x240] sm:$0xf]  ;;  %v4069_v2 = vld [vmem:[#allocation3 + $0x24c] sm:$0xf0]  ;;  %v2870_v6 = vor.u32 %v4037_v0, %v2869_v62  ;;  %1700 = vmatpush.bf16.msra.mxu3 %v3142_v63 }
  0x25   :  { %v3125_v3 = vld [vmem:[#allocation3 + $0x340] sm:$0xf]  ;;  %v4101_v4 = vld [vmem:[#allocation3 + $0x34c] sm:$0xf0]  ;;  %v2998_v7 = vor.u32 %v4069_v2, %v2997_v1  ;;  %1659 = vmatpush.bf16.msra.mxu0 %v2742_v5  ;;  %v4443_v2 = vor.u32 %v3992_v60, %v2685_v55 }
  0x26   :  { %v2725_v8 = vld [vmem:[#allocation3 + $0x20] sm:$0xf]  ;;  %v4001_v9 = vld [vmem:[#allocation3 + $0x2c] sm:$0xf0]  ;;  %v3126_v11 = vor.u32 %v4101_v4, %v3125_v3  ;;  %1673 = vmatpush.bf16.msra.mxu1 %v2870_v6 }
  0x27   :  { %v2853_v10 = vld [vmem:[#allocation3 + $0x120] sm:$0xf]  ;;  %v4033_v12 = vld [vmem:[#allocation3 + $0x12c] sm:$0xf0]  ;;  %v2726_v17 = vor.u32 %v4001_v9, %v2725_v8  ;;  %1687 = vmatpush.bf16.msra.mxu2 %v2998_v7  ;;  %v3988_v9 = vld [vmem:[%s4604_s0 + $0xc] sm:$0xf] }
  0x28   :  { %v2981_v13 = vld [vmem:[#allocation3 + $0x220] sm:$0xf]  ;;  %v4065_v14 = vld [vmem:[#allocation3 + $0x22c] sm:$0xf0]  ;;  %v2854_v20 = vor.u32 %v4033_v12, %v2853_v10  ;;  %1701 = vmatpush.bf16.msra.mxu3 %v3126_v11  ;;  %v2687_v12 = vld [vmem:[%s4604_s0 + $0x28] sm:$0xf0] }
  0x29   :  { %v3109_v15 = vld [vmem:[#allocation3 + $0x320] sm:$0xf]  ;;  %v4097_v16 = vld [vmem:[#allocation3 + $0x32c] sm:$0xf0]  ;;  %v2982_v21 = vor.u32 %v4065_v14, %v2981_v13  ;;  %1660 = vmatpush.bf16.msra.mxu0 %v2726_v17 }
  0x2a   :  { %v2709_v18 = vld [vmem:[#allocation3] sm:$0xf]  ;;  %v3997_v19 = vld [vmem:[#allocation3 + $0xc] sm:$0xf0]  ;;  %v3110_v25 = vor.u32 %v4097_v16, %v3109_v15  ;;  %1674 = vmatpush.bf16.msra.mxu1 %v2854_v20 }
  0x2b   :  { %v2837_v22 = vld [vmem:[#allocation3 + $0x100] sm:$0xf]  ;;  %v4029_v23 = vld [vmem:[#allocation3 + $0x10c] sm:$0xf0]  ;;  %v2710_v32 = vor.u32 %v3997_v19, %v2709_v18  ;;  %1688 = vmatpush.bf16.msra.mxu2 %v2982_v21  ;;  %v4461_v18 = vor.u32 %v3988_v9, %v2687_v12 }
  0x2c   :  { %v2965_v24 = vld [vmem:[#allocation3 + $0x200] sm:$0xf]  ;;  %v4061_v26 = vld [vmem:[#allocation3 + $0x20c] sm:$0xf0]  ;;  %v2838_v36 = vor.u32 %v4029_v23, %v2837_v22  ;;  %1702 = vmatpush.bf16.msra.mxu3 %v3110_v25 }
  0x2d   :  { %v3093_v27 = vld [vmem:[#allocation3 + $0x300] sm:$0xf]  ;;  %v4093_v28 = vld [vmem:[#allocation3 + $0x30c] sm:$0xf0]  ;;  %v2966_v37 = vor.u32 %v4061_v26, %v2965_v24  ;;  %1661 = vmatpush.bf16.msra.mxu0 %v2710_v32 }
  0x2e   :  { %v3333_v29 = vld [vmem:[#allocation3 + $0x4e0] sm:$0xf]  ;;  %v4153_v30 = vld [vmem:[#allocation3 + $0x4ec] sm:$0xf0]  ;;  %v3094_v40 = vor.u32 %v4093_v28, %v3093_v27  ;;  %1675 = vmatpush.bf16.msra.mxu1 %v2838_v36 }
  0x2f   :  { %v3461_v31 = vld [vmem:[#allocation3 + $0x5e0] sm:$0xf]  ;;  %v4185_v33 = vld [vmem:[#allocation3 + $0x5ec] sm:$0xf0]  ;;  %v3334_v41 = vor.u32 %v4153_v30, %v3333_v29  ;;  %1689 = vmatpush.bf16.msra.mxu2 %v2966_v37 }
  0x30   :  { %v3589_v34 = vld [vmem:[#allocation3 + $0x6e0] sm:$0xf]  ;;  %v4217_v35 = vld [vmem:[#allocation3 + $0x6ec] sm:$0xf0]  ;;  %v3462_v44 = vor.u32 %v4185_v33, %v3461_v31  ;;  %1703 = vmatpush.bf16.msra.mxu3 %v3094_v40 }
  0x31   :  { %v3717_v38 = vld [vmem:[#allocation3 + $0x7e0] sm:$0xf]  ;;  %v4249_v39 = vld [vmem:[#allocation3 + $0x7ec] sm:$0xf0]  ;;  %v3590_v45 = vor.u32 %v4217_v35, %v3589_v34  ;;  %1710 = vmatpush.bf16.msrb.mxu0 %v3334_v41 }
  0x32   :  { %v3317_v42 = vld [vmem:[#allocation3 + $0x4c0] sm:$0xf]  ;;  %v4149_v43 = vld [vmem:[#allocation3 + $0x4cc] sm:$0xf0]  ;;  %v3718_v49 = vor.u32 %v4249_v39, %v3717_v38  ;;  %1724 = vmatpush.bf16.msrb.mxu1 %v3462_v44  ;;  %1690 = vmatmul.bf16.vlgmr.msra.gmra.mxu2 %v4443_v2 }
  0x33   :  { %v3445_v46 = vld [vmem:[#allocation3 + $0x5c0] sm:$0xf]  ;;  %v4181_v47 = vld [vmem:[#allocation3 + $0x5cc] sm:$0xf0]  ;;  %v3318_v56 = vor.u32 %v4149_v43, %v3317_v42  ;;  %1738 = vmatpush.bf16.msrb.mxu2 %v3590_v45  ;;  %1704 = vmatmul.bf16.vlgmr.msra.gmra.mxu3 %v4461_v18 }
  0x34   :  { %v3573_v48 = vld [vmem:[#allocation3 + $0x6c0] sm:$0xf]  ;;  %v4213_v50 = vld [vmem:[#allocation3 + $0x6cc] sm:$0xf0]  ;;  %v3446_v61 = vor.u32 %v4181_v47, %v3445_v46  ;;  %1752 = vmatpush.bf16.msrb.mxu3 %v3718_v49 }
  0x35   :  { %v3701_v51 = vld [vmem:[#allocation3 + $0x7c0] sm:$0xf]  ;;  %v4245_v52 = vld [vmem:[#allocation3 + $0x7cc] sm:$0xf0]  ;;  %v3574_v62 = vor.u32 %v4213_v50, %v3573_v48  ;;  %1711 = vmatpush.bf16.msrb.mxu0 %v3318_v56 }
  0x36   :  { %v2677_v53 = vld [vmem:[%s4604_s0] sm:$0xf]  ;;  %v4145_v58 = vld [vmem:[#allocation3 + $0x4ac] sm:$0xf0]  ;;  %v3702_v3 = vor.u32 %v4245_v52, %v3701_v51  ;;  %v3987_v7 = vld [vmem:[%s4604_s0 + $0x4] sm:$0xf]  ;;  %1725 = vmatpush.bf16.msrb.mxu1 %v3446_v61 }
  0x37   :  { %v3991_v54 = vld [vmem:[%s4604_s0 + $0x1c] sm:$0xf0]  ;;  %v4177_v0 = vld [vmem:[#allocation3 + $0x5ac] sm:$0xf0]  ;;  %v2679_v8 = vld [vmem:[%s4604_s0 + $0x20] sm:$0xf0]  ;;  %1739 = vmatpush.bf16.msrb.mxu2 %v3574_v62 }
  0x38   :  { %v3301_v57 = vld [vmem:[#allocation3 + $0x4a0] sm:$0xf]  ;;  %v4438_v59 = vor.u32 %v3991_v54, %v2677_v53  ;;  %v4209_v4 = vld [vmem:[#allocation3 + $0x6ac] sm:$0xf0]  ;;  %v4456_v11 = vor.u32 %v3987_v7, %v2679_v8  ;;  %1753 = vmatpush.bf16.msrb.mxu3 %v3702_v3 }
  0x39   :  { %v3429_v63 = vld [vmem:[#allocation3 + $0x5a0] sm:$0xf]  ;;  %v4241_v6 = vld [vmem:[#allocation3 + $0x7ac] sm:$0xf0]  ;;  %v3302_v10 = vor.u32 %v4145_v58, %v3301_v57 }
  0x3a   :  { %v3557_v1 = vld [vmem:[#allocation3 + $0x6a0] sm:$0xf]  ;;  %1662 = vmatmul.bf16.vlgmr.msra.gmra.mxu0 %v4438_v59  ;;  %v3430_v13 = vor.u32 %v4177_v0, %v3429_v63  ;;  %v4141_v16 = vld [vmem:[#allocation3 + $0x48c] sm:$0xf0]  ;;  %1676 = vmatmul.bf16.vlgmr.msra.gmra.mxu1 %v4456_v11 }
  0x3b   :  { %v3685_v5 = vld [vmem:[#allocation3 + $0x7a0] sm:$0xf]  ;;  %v3558_v14 = vor.u32 %v4209_v4, %v3557_v1  ;;  %v4173_v20 = vld [vmem:[#allocation3 + $0x58c] sm:$0xf0]  ;;  %1712 = vmatpush.bf16.msrb.mxu0 %v3302_v10  ;;  %v4023_v10 = vld [vmem:[#allocation3 + $0xe4] sm:$0xf] }
  0x3c   :  { %v3285_v15 = vld [vmem:[#allocation3 + $0x480] sm:$0xf]  ;;  %v3686_v19 = vor.u32 %v4241_v6, %v3685_v5  ;;  %v4205_v22 = vld [vmem:[#allocation3 + $0x68c] sm:$0xf0]  ;;  %1726 = vmatpush.bf16.msrb.mxu1 %v3430_v13  ;;  %v2823_v13 = vld [vmem:[#allocation3 + $0xf0] sm:$0xf0] }
  0x3d   :  { %v3413_v17 = vld [vmem:[#allocation3 + $0x580] sm:$0xf]  ;;  %v4237_v24 = vld [vmem:[#allocation3 + $0x78c] sm:$0xf0]  ;;  %v3286_v25 = vor.u32 %v4141_v16, %v3285_v15  ;;  %1740 = vmatpush.bf16.msrb.mxu2 %v3558_v14  ;;  %v4055_v14 = vld [vmem:[#allocation3 + $0x1e4] sm:$0xf] }
  0x3e   :  { %v3541_v21 = vld [vmem:[#allocation3 + $0x680] sm:$0xf]  ;;  %v3414_v26 = vor.u32 %v4173_v20, %v3413_v17  ;;  %v4137_v29 = vld [vmem:[#allocation3 + $0x46c] sm:$0xf0]  ;;  %1754 = vmatpush.bf16.msrb.mxu3 %v3686_v19  ;;  %v2951_v15 = vld [vmem:[#allocation3 + $0x1f0] sm:$0xf0] }
  0x3f   :  { %v3669_v23 = vld [vmem:[#allocation3 + $0x780] sm:$0xf]  ;;  %v3542_v27 = vor.u32 %v4205_v22, %v3541_v21  ;;  %v4169_v32 = vld [vmem:[#allocation3 + $0x56c] sm:$0xf0]  ;;  %1713 = vmatpush.bf16.msrb.mxu0 %v3286_v25  ;;  %v4087_v16 = vld [vmem:[#allocation3 + $0x2e4] sm:$0xf] }
  0x40   :  { %v3269_v28 = vld [vmem:[#allocation3 + $0x460] sm:$0xf]  ;;  %v3670_v31 = vor.u32 %v4237_v24, %v3669_v23  ;;  %v4201_v34 = vld [vmem:[#allocation3 + $0x66c] sm:$0xf0]  ;;  %1727 = vmatpush.bf16.msrb.mxu1 %v3414_v26  ;;  %v3079_v17 = vld [vmem:[#allocation3 + $0x2f0] sm:$0xf0] }
  0x41   :  { %v3397_v30 = vld [vmem:[#allocation3 + $0x560] sm:$0xf]  ;;  %v4233_v36 = vld [vmem:[#allocation3 + $0x76c] sm:$0xf0]  ;;  %v3270_v37 = vor.u32 %v4137_v29, %v3269_v28  ;;  %1741 = vmatpush.bf16.msrb.mxu2 %v3542_v27  ;;  %v4119_v19 = vld [vmem:[#allocation3 + $0x3e4] sm:$0xf] }
  0x42   :  { %v3525_v33 = vld [vmem:[#allocation3 + $0x660] sm:$0xf]  ;;  %v3398_v38 = vor.u32 %v4169_v32, %v3397_v30  ;;  %v4133_v41 = vld [vmem:[#allocation3 + $0x44c] sm:$0xf0]  ;;  %1755 = vmatpush.bf16.msrb.mxu3 %v3670_v31  ;;  %v3207_v21 = vld [vmem:[#allocation3 + $0x3f0] sm:$0xf0]  ;;  %v2826_v30 = vor.u32 %v4023_v10, %v2823_v13 }
  0x43   :  { %v3653_v35 = vld [vmem:[#allocation3 + $0x760] sm:$0xf]  ;;  %v3526_v39 = vor.u32 %v4201_v34, %v3525_v33  ;;  %v4165_v44 = vld [vmem:[#allocation3 + $0x54c] sm:$0xf0]  ;;  %1714 = vmatpush.bf16.msrb.mxu0 %v3270_v37  ;;  %v2701_v26 = vld [vmem:[%s4604_s0 + $0x18] sm:$0xf]  ;;  %v2954_v34 = vor.u32 %v4055_v14, %v2951_v15 }
  0x44   :  { %v3253_v40 = vld [vmem:[#allocation3 + $0x440] sm:$0xf]  ;;  %v3654_v43 = vor.u32 %v4233_v36, %v3653_v35  ;;  %v4197_v46 = vld [vmem:[#allocation3 + $0x64c] sm:$0xf0]  ;;  %1728 = vmatpush.bf16.msrb.mxu1 %v3398_v38  ;;  %v3994_v27 = vld [vmem:[%s4604_s0 + $0x34] sm:$0xf0]  ;;  %v3082_v35 = vor.u32 %v4087_v16, %v3079_v17 }
  0x45   :  { %v3381_v42 = vld [vmem:[#allocation3 + $0x540] sm:$0xf]  ;;  %v4229_v48 = vld [vmem:[#allocation3 + $0x74c] sm:$0xf0]  ;;  %v3254_v49 = vor.u32 %v4133_v41, %v3253_v40  ;;  %1742 = vmatpush.bf16.msrb.mxu2 %v3526_v39  ;;  %v3990_v32 = vld [vmem:[%s4604_s0 + $0x1c] sm:$0xf]  ;;  %v3210_v39 = vor.u32 %v4119_v19, %v3207_v21 }
  0x46   :  { %v3509_v45 = vld [vmem:[#allocation3 + $0x640] sm:$0xf]  ;;  %v3382_v51 = vor.u32 %v4165_v44, %v3381_v42  ;;  %v4129_v53 = vld [vmem:[#allocation3 + $0x42c] sm:$0xf0]  ;;  %1756 = vmatpush.bf16.msrb.mxu3 %v3654_v43  ;;  %v2703_v33 = vld [vmem:[%s4604_s0 + $0x38] sm:$0xf0]  ;;  %v4491_v44 = vor.u32 %v3994_v27, %v2701_v26 }
  0x47   :  { %v3637_v47 = vld [vmem:[#allocation3 + $0x740] sm:$0xf]  ;;  %v3510_v52 = vor.u32 %v4197_v46, %v3509_v45  ;;  %v4161_v55 = vld [vmem:[#allocation3 + $0x52c] sm:$0xf0]  ;;  %1715 = vmatpush.bf16.msrb.mxu0 %v3254_v49  ;;  %v4019_v36 = vld [vmem:[#allocation3 + $0xc4] sm:$0xf] }
  0x48   :  { %v3237_v50 = vld [vmem:[#allocation3 + $0x420] sm:$0xf]  ;;  %v3638_v56 = vor.u32 %v4229_v48, %v3637_v47  ;;  %v4193_v58 = vld [vmem:[#allocation3 + $0x62c] sm:$0xf0]  ;;  %1729 = vmatpush.bf16.msrb.mxu1 %v3382_v51  ;;  %v2807_v37 = vld [vmem:[#allocation3 + $0xd0] sm:$0xf0]  ;;  %v4495_v48 = vor.u32 %v3990_v32, %v2703_v33 }
  0x49   :  { %v3365_v54 = vld [vmem:[#allocation3 + $0x520] sm:$0xf]  ;;  %v4225_v61 = vld [vmem:[#allocation3 + $0x72c] sm:$0xf0]  ;;  %v3238_v0 = vor.u32 %v4129_v53, %v3237_v50  ;;  %1743 = vmatpush.bf16.msrb.mxu2 %v3510_v52  ;;  %v4051_v38 = vld [vmem:[#allocation3 + $0x1c4] sm:$0xf]  ;;  %v2810_v49 = vor.u32 %v4019_v36, %v2807_v37 }
  0x4a   :  { %v3493_v57 = vld [vmem:[#allocation3 + $0x620] sm:$0xf]  ;;  %v4125_v63 = vld [vmem:[#allocation3 + $0x40c] sm:$0xf0]  ;;  %v3366_v6 = vor.u32 %v4161_v55, %v3365_v54  ;;  %1757 = vmatpush.bf16.msrb.mxu3 %v3638_v56  ;;  %v2935_v41 = vld [vmem:[#allocation3 + $0x1d0] sm:$0xf0] }
  0x4b   :  { %v3621_v60 = vld [vmem:[#allocation3 + $0x720] sm:$0xf]  ;;  %v4157_v3 = vld [vmem:[#allocation3 + $0x50c] sm:$0xf0]  ;;  %v3494_v7 = vor.u32 %v4193_v58, %v3493_v57  ;;  %1716 = vmatpush.bf16.msrb.mxu0 %v3238_v0  ;;  %v4083_v42 = vld [vmem:[#allocation3 + $0x2c4] sm:$0xf]  ;;  %v2938_v50 = vor.u32 %v4051_v38, %v2935_v41 }
  0x4c   :  { %v3221_v62 = vld [vmem:[#allocation3 + $0x400] sm:$0xf]  ;;  %v4189_v5 = vld [vmem:[#allocation3 + $0x60c] sm:$0xf0]  ;;  %v3622_v12 = vor.u32 %v4225_v61, %v3621_v60  ;;  %1730 = vmatpush.bf16.msrb.mxu1 %v3366_v6  ;;  %v3063_v43 = vld [vmem:[#allocation3 + $0x2d0] sm:$0xf0] }
  0x4d   :  { %v3349_v1 = vld [vmem:[#allocation3 + $0x500] sm:$0xf]  ;;  %v4221_v9 = vld [vmem:[#allocation3 + $0x70c] sm:$0xf0]  ;;  %v3222_v20 = vor.u32 %v4125_v63, %v3221_v62  ;;  %1744 = vmatpush.bf16.msrb.mxu2 %v3494_v7  ;;  %v4115_v46 = vld [vmem:[#allocation3 + $0x3c4] sm:$0xf]  ;;  %v3066_v51 = vor.u32 %v4083_v42, %v3063_v43 }
  0x4e   :  { %v3477_v4 = vld [vmem:[#allocation3 + $0x600] sm:$0xf]  ;;  %v2693_v22 = vld [vmem:[%s4604_s0 + $0x10] sm:$0xf]  ;;  %v3350_v24 = vor.u32 %v4157_v3, %v3349_v1  ;;  %v3989_v28 = vld [vmem:[%s4604_s0 + $0x14] sm:$0xf]  ;;  %1758 = vmatpush.bf16.msrb.mxu3 %v3622_v12 }
  0x4f   :  { %v3605_v8 = vld [vmem:[#allocation3 + $0x700] sm:$0xf]  ;;  %v3993_v23 = vld [vmem:[%s4604_s0 + $0x2c] sm:$0xf0]  ;;  %v3478_v25 = vor.u32 %v4189_v5, %v3477_v4  ;;  %v2695_v31 = vld [vmem:[%s4604_s0 + $0x30] sm:$0xf0]  ;;  %1717 = vmatpush.bf16.msrb.mxu0 %v3222_v20 }
  0x50   :  { %v3606_v29 = vor.u32 %v4221_v9, %v3605_v8  ;;  %v4489_v40 = vor.u32 %v3993_v23, %v2693_v22  ;;  %1731 = vmatpush.bf16.msrb.mxu1 %v3350_v24  ;;  %v4493_v45 = vor.u32 %v3989_v28, %v2695_v31  ;;  %v3191_v47 = vld [vmem:[#allocation3 + $0x3d0] sm:$0xf0]  ;;  %v4015_v52 = vld [vmem:[#allocation3 + $0xa4] sm:$0xf] }
  0x51   :  { %1745 = vmatpush.bf16.msrb.mxu2 %v3478_v25  ;;  %v2791_v53 = vld [vmem:[#allocation3 + $0xb0] sm:$0xf0]  ;;  %v4047_v54 = vld [vmem:[#allocation3 + $0x1a4] sm:$0xf]  ;;  %v3194_v55 = vor.u32 %v4115_v46, %v3191_v47 }
  0x52   :  { %1759 = vmatpush.bf16.msrb.mxu3 %v3606_v29  ;;  %1718 = vmatmul.bf16.vlgmr.msrb.gmra.mxu0 %v4489_v40  ;;  %v2919_v56 = vld [vmem:[#allocation3 + $0x1b0] sm:$0xf0]  ;;  %v4079_v57 = vld [vmem:[#allocation3 + $0x2a4] sm:$0xf]  ;;  %v2794_v62 = vor.u32 %v4015_v52, %v2791_v53 }
  0x53   :  { %1766 = vmatpush.bf16.msra.mxu0 %v2826_v30  ;;  %v3047_v58 = vld [vmem:[#allocation3 + $0x2b0] sm:$0xf0]  ;;  %1732 = vmatmul.bf16.vlgmr.msrb.gmra.mxu1 %v4493_v45  ;;  %v4111_v60 = vld [vmem:[#allocation3 + $0x3a4] sm:$0xf]  ;;  %v2922_v63 = vor.u32 %v4047_v54, %v2919_v56 }
  0x54   :  { %1780 = vmatpush.bf16.msra.mxu1 %v2954_v34  ;;  %1746 = vmatmul.bf16.vlgmr.msrb.gmra.mxu2 %v4491_v44  ;;  %v3175_v61 = vld [vmem:[#allocation3 + $0x3b0] sm:$0xf0]  ;;  %v3050_v0 = vor.u32 %v4079_v57, %v3047_v58  ;;  %v4011_v1 = vld [vmem:[#allocation3 + $0x84] sm:$0xf] }
  0x55   :  { %1794 = vmatpush.bf16.msra.mxu2 %v3082_v35  ;;  %1760 = vmatmul.bf16.vlgmr.msrb.gmra.mxu3 %v4495_v48  ;;  %v2775_v3 = vld [vmem:[#allocation3 + $0x90] sm:$0xf0]  ;;  %v4043_v4 = vld [vmem:[#allocation3 + $0x184] sm:$0xf]  ;;  %v3178_v5 = vor.u32 %v4111_v60, %v3175_v61 }
  0x56   :  { %1808 = vmatpush.bf16.msra.mxu3 %v3210_v39  ;;  %v2903_v6 = vld [vmem:[#allocation3 + $0x190] sm:$0xf0]  ;;  %v4075_v7 = vld [vmem:[#allocation3 + $0x284] sm:$0xf]  ;;  %v2778_v12 = vor.u32 %v4011_v1, %v2775_v3 }
  0x57   :  { %1767 = vmatpush.bf16.msra.mxu0 %v2810_v49  ;;  %v3031_v8 = vld [vmem:[#allocation3 + $0x290] sm:$0xf0]  ;;  %v4107_v9 = vld [vmem:[#allocation3 + $0x384] sm:$0xf]  ;;  %v2906_v13 = vor.u32 %v4043_v4, %v2903_v6 }
  0x58   :  { %1781 = vmatpush.bf16.msra.mxu1 %v2938_v50  ;;  %v3159_v10 = vld [vmem:[#allocation3 + $0x390] sm:$0xf0]  ;;  %v3034_v14 = vor.u32 %v4075_v7, %v3031_v8  ;;  %v4007_v15 = vld [vmem:[#allocation3 + $0x64] sm:$0xf] }
  0x59   :  { %1795 = vmatpush.bf16.msra.mxu2 %v3066_v51  ;;  %v2759_v16 = vld [vmem:[#allocation3 + $0x70] sm:$0xf0]  ;;  %v4039_v17 = vld [vmem:[#allocation3 + $0x164] sm:$0xf]  ;;  %v3162_v19 = vor.u32 %v4107_v9, %v3159_v10 }
  0x5a   :  { %1809 = vmatpush.bf16.msra.mxu3 %v3194_v55  ;;  %v2887_v20 = vld [vmem:[#allocation3 + $0x170] sm:$0xf0]  ;;  %v4071_v21 = vld [vmem:[#allocation3 + $0x264] sm:$0xf]  ;;  %v2762_v25 = vor.u32 %v4007_v15, %v2759_v16 }
  0x5b   :  { %1768 = vmatpush.bf16.msra.mxu0 %v2794_v62  ;;  %v3015_v22 = vld [vmem:[#allocation3 + $0x270] sm:$0xf0]  ;;  %v4103_v23 = vld [vmem:[#allocation3 + $0x364] sm:$0xf]  ;;  %v2890_v26 = vor.u32 %v4039_v17, %v2887_v20 }
  0x5c   :  { %1782 = vmatpush.bf16.msra.mxu1 %v2922_v63  ;;  %v3143_v24 = vld [vmem:[#allocation3 + $0x370] sm:$0xf0]  ;;  %v3018_v27 = vor.u32 %v4071_v21, %v3015_v22  ;;  %v4003_v28 = vld [vmem:[#allocation3 + $0x44] sm:$0xf] }
  0x5d   :  { %1796 = vmatpush.bf16.msra.mxu2 %v3050_v0  ;;  %v2743_v29 = vld [vmem:[#allocation3 + $0x50] sm:$0xf0]  ;;  %v4035_v30 = vld [vmem:[#allocation3 + $0x144] sm:$0xf]  ;;  %v3146_v31 = vor.u32 %v4103_v23, %v3143_v24 }
  0x5e   :  { %1810 = vmatpush.bf16.msra.mxu3 %v3178_v5  ;;  %v2871_v32 = vld [vmem:[#allocation3 + $0x150] sm:$0xf0]  ;;  %v4067_v33 = vld [vmem:[#allocation3 + $0x244] sm:$0xf]  ;;  %v2746_v37 = vor.u32 %v4003_v28, %v2743_v29 }
  0x5f   :  { %1769 = vmatpush.bf16.msra.mxu0 %v2778_v12  ;;  %v2999_v34 = vld [vmem:[#allocation3 + $0x250] sm:$0xf0]  ;;  %v4099_v35 = vld [vmem:[#allocation3 + $0x344] sm:$0xf]  ;;  %v2874_v38 = vor.u32 %v4035_v30, %v2871_v32 }
  0x60   :  { %1783 = vmatpush.bf16.msra.mxu1 %v2906_v13  ;;  %v3127_v36 = vld [vmem:[#allocation3 + $0x350] sm:$0xf0]  ;;  %v3002_v39 = vor.u32 %v4067_v33, %v2999_v34  ;;  %v3999_v41 = vld [vmem:[#allocation3 + $0x24] sm:$0xf] }
  0x61   :  { %1797 = vmatpush.bf16.msra.mxu2 %v3034_v14  ;;  %v2727_v42 = vld [vmem:[#allocation3 + $0x30] sm:$0xf0]  ;;  %v4031_v43 = vld [vmem:[#allocation3 + $0x124] sm:$0xf]  ;;  %v3130_v46 = vor.u32 %v4099_v35, %v3127_v36 }
  0x62   :  { %1811 = vmatpush.bf16.msra.mxu3 %v3162_v19  ;;  %v2855_v47 = vld [vmem:[#allocation3 + $0x130] sm:$0xf0]  ;;  %v4063_v49 = vld [vmem:[#allocation3 + $0x224] sm:$0xf]  ;;  %v2730_v53 = vor.u32 %v3999_v41, %v2727_v42 }
  0x63   :  { %1770 = vmatpush.bf16.msra.mxu0 %v2762_v25  ;;  %v2983_v50 = vld [vmem:[#allocation3 + $0x230] sm:$0xf0]  ;;  %v4095_v51 = vld [vmem:[#allocation3 + $0x324] sm:$0xf]  ;;  %v2858_v56 = vor.u32 %v4031_v43, %v2855_v47 }
  0x64   :  { %1784 = vmatpush.bf16.msra.mxu1 %v2890_v26  ;;  %v3111_v52 = vld [vmem:[#allocation3 + $0x330] sm:$0xf0]  ;;  %v3995_v54 = vld [vmem:[#allocation3 + $0x4] sm:$0xf]  ;;  %v2986_v57 = vor.u32 %v4063_v49, %v2983_v50 }
  0x65   :  { %1798 = vmatpush.bf16.msra.mxu2 %v3018_v27  ;;  %v2711_v55 = vld [vmem:[#allocation3 + $0x10] sm:$0xf0]  ;;  %v4027_v58 = vld [vmem:[#allocation3 + $0x104] sm:$0xf]  ;;  %v3114_v62 = vor.u32 %v4095_v51, %v3111_v52 }
  0x66   :  { %1812 = vmatpush.bf16.msra.mxu3 %v3146_v31  ;;  %v2839_v60 = vld [vmem:[#allocation3 + $0x110] sm:$0xf0]  ;;  %v4059_v61 = vld [vmem:[#allocation3 + $0x204] sm:$0xf]  ;;  %v2714_v6 = vor.u32 %v3995_v54, %v2711_v55 }
  0x67   :  { %1771 = vmatpush.bf16.msra.mxu0 %v2746_v37  ;;  %v2967_v63 = vld [vmem:[#allocation3 + $0x210] sm:$0xf0]  ;;  %v4091_v0 = vld [vmem:[#allocation3 + $0x304] sm:$0xf]  ;;  %v2842_v10 = vor.u32 %v4027_v58, %v2839_v60 }
  0x68   :  { %1785 = vmatpush.bf16.msra.mxu1 %v2874_v38  ;;  %v3095_v1 = vld [vmem:[#allocation3 + $0x310] sm:$0xf0]  ;;  %v4151_v3 = vld [vmem:[#allocation3 + $0x4e4] sm:$0xf]  ;;  %v2970_v12 = vor.u32 %v4059_v61, %v2967_v63 }
  0x69   :  { %1799 = vmatpush.bf16.msra.mxu2 %v3002_v39  ;;  %v3335_v4 = vld [vmem:[#allocation3 + $0x4f0] sm:$0xf0]  ;;  %v4183_v5 = vld [vmem:[#allocation3 + $0x5e4] sm:$0xf]  ;;  %v3098_v15 = vor.u32 %v4091_v0, %v3095_v1 }
  0x6a   :  { %1813 = vmatpush.bf16.msra.mxu3 %v3130_v46  ;;  %v3463_v7 = vld [vmem:[#allocation3 + $0x5f0] sm:$0xf0]  ;;  %v4215_v8 = vld [vmem:[#allocation3 + $0x6e4] sm:$0xf]  ;;  %v3338_v16 = vor.u32 %v4151_v3, %v3335_v4 }
  0x6b   :  { %1772 = vmatpush.bf16.msra.mxu0 %v2730_v53  ;;  %v3591_v9 = vld [vmem:[#allocation3 + $0x6f0] sm:$0xf0]  ;;  %v4247_v13 = vld [vmem:[#allocation3 + $0x7e4] sm:$0xf]  ;;  %v3466_v17 = vor.u32 %v4183_v5, %v3463_v7 }
  0x6c   :  { %1786 = vmatpush.bf16.msra.mxu1 %v2858_v56  ;;  %v3719_v14 = vld [vmem:[#allocation3 + $0x7f0] sm:$0xf0]  ;;  %v3594_v19 = vor.u32 %v4215_v8, %v3591_v9  ;;  %v4147_v20 = vld [vmem:[#allocation3 + $0x4c4] sm:$0xf] }
  0x6d   :  { %1800 = vmatpush.bf16.msra.mxu2 %v2986_v57  ;;  %v3319_v21 = vld [vmem:[#allocation3 + $0x4d0] sm:$0xf0]  ;;  %v4179_v22 = vld [vmem:[#allocation3 + $0x5c4] sm:$0xf]  ;;  %v3722_v23 = vor.u32 %v4247_v13, %v3719_v14 }
  0x6e   :  { %1814 = vmatpush.bf16.msra.mxu3 %v3114_v62  ;;  %v3447_v24 = vld [vmem:[#allocation3 + $0x5d0] sm:$0xf0]  ;;  %v4211_v25 = vld [vmem:[#allocation3 + $0x6c4] sm:$0xf]  ;;  %v3322_v29 = vor.u32 %v4147_v20, %v3319_v21 }
  0x6f   :  { %1773 = vmatpush.bf16.msra.mxu0 %v2714_v6  ;;  %v3575_v26 = vld [vmem:[#allocation3 + $0x6d0] sm:$0xf0]  ;;  %v4243_v27 = vld [vmem:[#allocation3 + $0x7c4] sm:$0xf]  ;;  %v3450_v30 = vor.u32 %v4179_v22, %v3447_v24 }
  0x70   :  { %1787 = vmatpush.bf16.msra.mxu1 %v2842_v10  ;;  %v3703_v28 = vld [vmem:[#allocation3 + $0x7d0] sm:$0xf0]  ;;  %v3578_v31 = vor.u32 %v4211_v25, %v3575_v26  ;;  %v4143_v32 = vld [vmem:[#allocation3 + $0x4a4] sm:$0xf] }
  0x71   :  { %1801 = vmatpush.bf16.msra.mxu2 %v2970_v12  ;;  %v3303_v33 = vld [vmem:[#allocation3 + $0x4b0] sm:$0xf0]  ;;  %v4175_v34 = vld [vmem:[#allocation3 + $0x5a4] sm:$0xf]  ;;  %v3706_v35 = vor.u32 %v4243_v27, %v3703_v28 }
  0x72   :  { %1815 = vmatpush.bf16.msra.mxu3 %v3098_v15  ;;  %v3431_v36 = vld [vmem:[#allocation3 + $0x5b0] sm:$0xf0]  ;;  %v4207_v37 = vld [vmem:[#allocation3 + $0x6a4] sm:$0xf]  ;;  %1774 = vmatmul.bf16.vlgmr.msra.gmra.mxu0 %v4438_v59  ;;  %v3306_v42 = vor.u32 %v4143_v32, %v3303_v33 }
  0x73   :  { %1822 = vmatpush.bf16.msrb.mxu0 %v3338_v16  ;;  %v3559_v38 = vld [vmem:[#allocation3 + $0x6b0] sm:$0xf0]  ;;  %v4239_v39 = vld [vmem:[#allocation3 + $0x7a4] sm:$0xf]  ;;  %1788 = vmatmul.bf16.vlgmr.msra.gmra.mxu1 %v4456_v11  ;;  %v3434_v43 = vor.u32 %v4175_v34, %v3431_v36 }
  0x74   :  { %1836 = vmatpush.bf16.msrb.mxu1 %v3466_v17  ;;  %v3687_v41 = vld [vmem:[#allocation3 + $0x7b0] sm:$0xf0]  ;;  %1802 = vmatmul.bf16.vlgmr.msra.gmra.mxu2 %v4443_v2  ;;  %v3562_v46 = vor.u32 %v4207_v37, %v3559_v38  ;;  %v4139_v47 = vld [vmem:[#allocation3 + $0x484] sm:$0xf] }
  0x75   :  { %1850 = vmatpush.bf16.msrb.mxu2 %v3594_v19  ;;  %1816 = vmatmul.bf16.vlgmr.msra.gmra.mxu3 %v4461_v18  ;;  %v3287_v49 = vld [vmem:[#allocation3 + $0x490] sm:$0xf0]  ;;  %v4171_v50 = vld [vmem:[#allocation3 + $0x584] sm:$0xf]  ;;  %v3690_v51 = vor.u32 %v4239_v39, %v3687_v41 }
  0x76   :  { %1864 = vmatpush.bf16.msrb.mxu3 %v3722_v23  ;;  %v3415_v52 = vld [vmem:[#allocation3 + $0x590] sm:$0xf0]  ;;  %v4203_v53 = vld [vmem:[#allocation3 + $0x684] sm:$0xf]  ;;  %v3290_v57 = vor.u32 %v4139_v47, %v3287_v49  ;;  %v2829_v49 = vld [vmem:[#allocation3 + $0xe8] sm:$0xf] }
  0x77   :  { %1823 = vmatpush.bf16.msrb.mxu0 %v3322_v29  ;;  %v3543_v54 = vld [vmem:[#allocation3 + $0x690] sm:$0xf0]  ;;  %v4235_v55 = vld [vmem:[#allocation3 + $0x784] sm:$0xf]  ;;  %v3418_v58 = vor.u32 %v4171_v50, %v3415_v52  ;;  %v4026_v50 = vld [vmem:[#allocation3 + $0xf4] sm:$0xf0] }
  0x78   :  { %1837 = vmatpush.bf16.msrb.mxu1 %v3450_v30  ;;  %v3671_v56 = vld [vmem:[#allocation3 + $0x790] sm:$0xf0]  ;;  %v3546_v60 = vor.u32 %v4203_v53, %v3543_v54  ;;  %v4135_v61 = vld [vmem:[#allocation3 + $0x464] sm:$0xf]  ;;  %v4058_v53 = vld [vmem:[#allocation3 + $0x1f4] sm:$0xf0] }
  0x79   :  { %1851 = vmatpush.bf16.msrb.mxu2 %v3578_v31  ;;  %v3271_v62 = vld [vmem:[#allocation3 + $0x470] sm:$0xf0]  ;;  %v4167_v63 = vld [vmem:[#allocation3 + $0x564] sm:$0xf]  ;;  %v3674_v0 = vor.u32 %v4235_v55, %v3671_v56  ;;  %v3085_v54 = vld [vmem:[#allocation3 + $0x2e8] sm:$0xf] }
  0x7a   :  { %1865 = vmatpush.bf16.msrb.mxu3 %v3706_v35  ;;  %v3399_v1 = vld [vmem:[#allocation3 + $0x570] sm:$0xf0]  ;;  %v4199_v3 = vld [vmem:[#allocation3 + $0x664] sm:$0xf]  ;;  %v3274_v7 = vor.u32 %v4135_v61, %v3271_v62  ;;  %v4090_v55 = vld [vmem:[#allocation3 + $0x2f4] sm:$0xf0]  ;;  %v2830_v62 = vor.u32 %v4026_v50, %v2829_v49 }
  0x7b   :  { %1824 = vmatpush.bf16.msrb.mxu0 %v3306_v42  ;;  %v3527_v4 = vld [vmem:[#allocation3 + $0x670] sm:$0xf0]  ;;  %v4231_v5 = vld [vmem:[#allocation3 + $0x764] sm:$0xf]  ;;  %v3402_v8 = vor.u32 %v4167_v63, %v3399_v1  ;;  %v2813_v1 = vld [vmem:[#allocation3 + $0xc8] sm:$0xf] }
  0x7c   :  { %1838 = vmatpush.bf16.msrb.mxu1 %v3434_v43  ;;  %v3655_v6 = vld [vmem:[#allocation3 + $0x770] sm:$0xf0]  ;;  %v3530_v9 = vor.u32 %v4199_v3, %v3527_v4  ;;  %v4131_v10 = vld [vmem:[#allocation3 + $0x444] sm:$0xf]  ;;  %v4022_v3 = vld [vmem:[#allocation3 + $0xd4] sm:$0xf0] }
  0x7d   :  { %1852 = vmatpush.bf16.msrb.mxu2 %v3562_v46  ;;  %v3255_v12 = vld [vmem:[#allocation3 + $0x450] sm:$0xf0]  ;;  %v4163_v13 = vld [vmem:[#allocation3 + $0x544] sm:$0xf]  ;;  %v3658_v14 = vor.u32 %v4231_v5, %v3655_v6  ;;  %v2941_v4 = vld [vmem:[#allocation3 + $0x1c8] sm:$0xf] }
  0x7e   :  { %1866 = vmatpush.bf16.msrb.mxu3 %v3690_v51  ;;  %v3383_v15 = vld [vmem:[#allocation3 + $0x550] sm:$0xf0]  ;;  %v4195_v16 = vld [vmem:[#allocation3 + $0x644] sm:$0xf]  ;;  %v3258_v21 = vor.u32 %v4131_v10, %v3255_v12  ;;  %v2957_v51 = vld [vmem:[#allocation3 + $0x1e8] sm:$0xf]  ;;  %v2814_v12 = vor.u32 %v4022_v3, %v2813_v1 }
  0x7f   :  { %1825 = vmatpush.bf16.msrb.mxu0 %v3290_v57  ;;  %v3511_v17 = vld [vmem:[#allocation3 + $0x650] sm:$0xf0]  ;;  %v4227_v19 = vld [vmem:[#allocation3 + $0x744] sm:$0xf]  ;;  %v3386_v22 = vor.u32 %v4163_v13, %v3383_v15  ;;  %v2958_v63 = vor.u32 %v4058_v53, %v2957_v51  ;;  %v4054_v6 = vld [vmem:[#allocation3 + $0x1d4] sm:$0xf0] }
  0x80   :  { %1839 = vmatpush.bf16.msrb.mxu1 %v3418_v58  ;;  %v3639_v20 = vld [vmem:[#allocation3 + $0x750] sm:$0xf0]  ;;  %v3514_v23 = vor.u32 %v4195_v16, %v3511_v17  ;;  %v4127_v24 = vld [vmem:[#allocation3 + $0x424] sm:$0xf]  ;;  %v3213_v58 = vld [vmem:[#allocation3 + $0x3e8] sm:$0xf]  ;;  %v2942_v13 = vor.u32 %v4054_v6, %v2941_v4 }
  0x81   :  { %1853 = vmatpush.bf16.msrb.mxu2 %v3546_v60  ;;  %v3239_v25 = vld [vmem:[#allocation3 + $0x430] sm:$0xf0]  ;;  %v4159_v26 = vld [vmem:[#allocation3 + $0x524] sm:$0xf]  ;;  %v3642_v27 = vor.u32 %v4227_v19, %v3639_v20  ;;  %v4122_v60 = vld [vmem:[#allocation3 + $0x3f4] sm:$0xf0] }
  0x82   :  { %1867 = vmatpush.bf16.msrb.mxu3 %v3674_v0  ;;  %v3367_v28 = vld [vmem:[#allocation3 + $0x530] sm:$0xf0]  ;;  %v4191_v29 = vld [vmem:[#allocation3 + $0x624] sm:$0xf]  ;;  %v3242_v33 = vor.u32 %v4127_v24, %v3239_v25  ;;  %v3086_v0 = vor.u32 %v4090_v55, %v3085_v54  ;;  %v3214_v5 = vor.u32 %v4122_v60, %v3213_v58  ;;  %v4118_v10 = vld [vmem:[#allocation3 + $0x3d4] sm:$0xf0] }
  0x83   :  { %1826 = vmatpush.bf16.msrb.mxu0 %v3274_v7  ;;  %v3495_v30 = vld [vmem:[#allocation3 + $0x630] sm:$0xf0]  ;;  %v4223_v31 = vld [vmem:[#allocation3 + $0x724] sm:$0xf]  ;;  %v3370_v36 = vor.u32 %v4159_v26, %v3367_v28  ;;  %v3069_v7 = vld [vmem:[#allocation3 + $0x2c8] sm:$0xf] }
  0x84   :  { %1840 = vmatpush.bf16.msrb.mxu1 %v3402_v8  ;;  %v3623_v32 = vld [vmem:[#allocation3 + $0x730] sm:$0xf0]  ;;  %v4123_v34 = vld [vmem:[#allocation3 + $0x404] sm:$0xf]  ;;  %v3498_v37 = vor.u32 %v4191_v29, %v3495_v30  ;;  %v4086_v8 = vld [vmem:[#allocation3 + $0x2d4] sm:$0xf0] }
  0x85   :  { %1854 = vmatpush.bf16.msrb.mxu2 %v3530_v9  ;;  %v3223_v35 = vld [vmem:[#allocation3 + $0x410] sm:$0xf0]  ;;  %v4155_v38 = vld [vmem:[#allocation3 + $0x504] sm:$0xf]  ;;  %v3626_v42 = vor.u32 %v4223_v31, %v3623_v32  ;;  %v3197_v9 = vld [vmem:[#allocation3 + $0x3c8] sm:$0xf] }
  0x86   :  { %1868 = vmatpush.bf16.msrb.mxu3 %v3658_v14  ;;  %v3351_v39 = vld [vmem:[#allocation3 + $0x510] sm:$0xf0]  ;;  %v4187_v41 = vld [vmem:[#allocation3 + $0x604] sm:$0xf]  ;;  %v3226_v52 = vor.u32 %v4123_v34, %v3223_v35  ;;  %v3070_v14 = vor.u32 %v4086_v8, %v3069_v7  ;;  %v2797_v15 = vld [vmem:[#allocation3 + $0xa8] sm:$0xf]  ;;  %v3198_v19 = vor.u32 %v4118_v10, %v3197_v9 }
  0x87   :  { %1827 = vmatpush.bf16.msrb.mxu0 %v3258_v21  ;;  %v3479_v43 = vld [vmem:[#allocation3 + $0x610] sm:$0xf0]  ;;  %v4219_v46 = vld [vmem:[#allocation3 + $0x704] sm:$0xf]  ;;  %v3354_v56 = vor.u32 %v4155_v38, %v3351_v39  ;;  %v4018_v16 = vld [vmem:[#allocation3 + $0xb4] sm:$0xf0] }
  0x88   :  { %1841 = vmatpush.bf16.msrb.mxu1 %v3386_v22  ;;  %v3607_v47 = vld [vmem:[#allocation3 + $0x710] sm:$0xf0]  ;;  %v3482_v57 = vor.u32 %v4187_v41, %v3479_v43  ;;  %v2925_v17 = vld [vmem:[#allocation3 + $0x1a8] sm:$0xf]  ;;  %v4050_v20 = vld [vmem:[#allocation3 + $0x1b4] sm:$0xf0]  ;;  %v2798_v25 = vor.u32 %v4018_v16, %v2797_v15 }
  0x89   :  { %1855 = vmatpush.bf16.msrb.mxu2 %v3514_v23  ;;  %v3610_v61 = vor.u32 %v4219_v46, %v3607_v47  ;;  %v3053_v21 = vld [vmem:[#allocation3 + $0x2a8] sm:$0xf]  ;;  %v4082_v22 = vld [vmem:[#allocation3 + $0x2b4] sm:$0xf0]  ;;  %v2926_v26 = vor.u32 %v4050_v20, %v2925_v17 }
  0x8a   :  { %1869 = vmatpush.bf16.msrb.mxu3 %v3642_v27  ;;  %v3181_v23 = vld [vmem:[#allocation3 + $0x3a8] sm:$0xf]  ;;  %v4114_v24 = vld [vmem:[#allocation3 + $0x3b4] sm:$0xf0]  ;;  %v3054_v27 = vor.u32 %v4082_v22, %v3053_v21 }
  0x8b   :  { %1828 = vmatpush.bf16.msrb.mxu0 %v3242_v33  ;;  %v2781_v28 = vld [vmem:[#allocation3 + $0x88] sm:$0xf]  ;;  %v4014_v29 = vld [vmem:[#allocation3 + $0x94] sm:$0xf0]  ;;  %v3182_v31 = vor.u32 %v4114_v24, %v3181_v23 }
  0x8c   :  { %1842 = vmatpush.bf16.msrb.mxu1 %v3370_v36  ;;  %v2909_v30 = vld [vmem:[#allocation3 + $0x188] sm:$0xf]  ;;  %v4046_v32 = vld [vmem:[#allocation3 + $0x194] sm:$0xf0] }
  0x8d   :  { %1856 = vmatpush.bf16.msrb.mxu2 %v3498_v37  ;;  %v3037_v33 = vld [vmem:[#allocation3 + $0x288] sm:$0xf]  ;;  %v4078_v34 = vld [vmem:[#allocation3 + $0x294] sm:$0xf0]  ;;  %v2782_v37 = vor.u32 %v4014_v29, %v2781_v28  ;;  %v2910_v38 = vor.u32 %v4046_v32, %v2909_v30 }
  0x8e   :  { %1870 = vmatpush.bf16.msrb.mxu3 %v3626_v42  ;;  %v3165_v35 = vld [vmem:[#allocation3 + $0x388] sm:$0xf]  ;;  %v4110_v36 = vld [vmem:[#allocation3 + $0x394] sm:$0xf0]  ;;  %v3038_v39 = vor.u32 %v4078_v34, %v3037_v33 }
  0x8f   :  { %1829 = vmatpush.bf16.msrb.mxu0 %v3226_v52  ;;  %v2765_v41 = vld [vmem:[#allocation3 + $0x68] sm:$0xf]  ;;  %v4010_v42 = vld [vmem:[#allocation3 + $0x74] sm:$0xf0]  ;;  %v3166_v46 = vor.u32 %v4110_v36, %v3165_v35 }
  0x90   :  { %1843 = vmatpush.bf16.msrb.mxu1 %v3354_v56  ;;  %v2893_v43 = vld [vmem:[#allocation3 + $0x168] sm:$0xf]  ;;  %v4042_v47 = vld [vmem:[#allocation3 + $0x174] sm:$0xf0]  ;;  %v2766_v53 = vor.u32 %v4010_v42, %v2765_v41 }
  0x91   :  { %1857 = vmatpush.bf16.msrb.mxu2 %v3482_v57  ;;  %v3021_v49 = vld [vmem:[#allocation3 + $0x268] sm:$0xf]  ;;  %v4074_v50 = vld [vmem:[#allocation3 + $0x274] sm:$0xf0]  ;;  %v2894_v54 = vor.u32 %v4042_v47, %v2893_v43 }
  0x92   :  { %1871 = vmatpush.bf16.msrb.mxu3 %v3610_v61  ;;  %1830 = vmatmul.bf16.vlgmr.msrb.gmra.mxu0 %v4489_v40  ;;  %v3149_v51 = vld [vmem:[#allocation3 + $0x368] sm:$0xf]  ;;  %v4106_v52 = vld [vmem:[#allocation3 + $0x374] sm:$0xf0]  ;;  %v3022_v55 = vor.u32 %v4074_v50, %v3021_v49 }
  0x93   :  { %1878 = vmatpush.bf16.msra.mxu0 %v2830_v62  ;;  %1844 = vmatmul.bf16.vlgmr.msrb.gmra.mxu1 %v4493_v45  ;;  %v2749_v56 = vld [vmem:[#allocation3 + $0x48] sm:$0xf]  ;;  %v4006_v57 = vld [vmem:[#allocation3 + $0x54] sm:$0xf0]  ;;  %v3150_v60 = vor.u32 %v4106_v52, %v3149_v51 }
  0x94   :  { %1892 = vmatpush.bf16.msra.mxu1 %v2958_v63  ;;  %1858 = vmatmul.bf16.vlgmr.msrb.gmra.mxu2 %v4491_v44  ;;  %v2877_v58 = vld [vmem:[#allocation3 + $0x148] sm:$0xf]  ;;  %v4038_v61 = vld [vmem:[#allocation3 + $0x154] sm:$0xf0]  ;;  %v2750_v3 = vor.u32 %v4006_v57, %v2749_v56 }
  0x95   :  { %1906 = vmatpush.bf16.msra.mxu2 %v3086_v0  ;;  %1872 = vmatmul.bf16.vlgmr.msrb.gmra.mxu3 %v4495_v48  ;;  %v3005_v62 = vld [vmem:[#allocation3 + $0x248] sm:$0xf]  ;;  %v4070_v63 = vld [vmem:[#allocation3 + $0x254] sm:$0xf0]  ;;  %v2878_v4 = vor.u32 %v4038_v61, %v2877_v58 }
  0x96   :  { %1920 = vmatpush.bf16.msra.mxu3 %v3214_v5  ;;  %v3133_v0 = vld [vmem:[#allocation3 + $0x348] sm:$0xf]  ;;  %v4102_v1 = vld [vmem:[#allocation3 + $0x354] sm:$0xf0]  ;;  %v3006_v5 = vor.u32 %v4070_v63, %v3005_v62 }
  0x97   :  { %1879 = vmatpush.bf16.msra.mxu0 %v2814_v12  ;;  %v2733_v6 = vld [vmem:[#allocation3 + $0x28] sm:$0xf]  ;;  %v4002_v7 = vld [vmem:[#allocation3 + $0x34] sm:$0xf0]  ;;  %v3134_v9 = vor.u32 %v4102_v1, %v3133_v0 }
  0x98   :  { %1893 = vmatpush.bf16.msra.mxu1 %v2942_v13  ;;  %v2861_v8 = vld [vmem:[#allocation3 + $0x128] sm:$0xf]  ;;  %v4034_v10 = vld [vmem:[#allocation3 + $0x134] sm:$0xf0]  ;;  %v2734_v16 = vor.u32 %v4002_v7, %v2733_v6 }
  0x99   :  { %1907 = vmatpush.bf16.msra.mxu2 %v3070_v14  ;;  %v2989_v12 = vld [vmem:[#allocation3 + $0x228] sm:$0xf]  ;;  %v4066_v13 = vld [vmem:[#allocation3 + $0x234] sm:$0xf0]  ;;  %v2862_v20 = vor.u32 %v4034_v10, %v2861_v8 }
  0x9a   :  { %1921 = vmatpush.bf16.msra.mxu3 %v3198_v19  ;;  %v3117_v14 = vld [vmem:[#allocation3 + $0x328] sm:$0xf]  ;;  %v4098_v15 = vld [vmem:[#allocation3 + $0x334] sm:$0xf0]  ;;  %v2990_v21 = vor.u32 %v4066_v13, %v2989_v12 }
  0x9b   :  { %1880 = vmatpush.bf16.msra.mxu0 %v2798_v25  ;;  %v2717_v17 = vld [vmem:[#allocation3 + $0x8] sm:$0xf]  ;;  %v3998_v19 = vld [vmem:[#allocation3 + $0x14] sm:$0xf0]  ;;  %v3118_v25 = vor.u32 %v4098_v15, %v3117_v14 }
  0x9c   :  { %1894 = vmatpush.bf16.msra.mxu1 %v2926_v26  ;;  %v2845_v22 = vld [vmem:[#allocation3 + $0x108] sm:$0xf]  ;;  %v4030_v23 = vld [vmem:[#allocation3 + $0x114] sm:$0xf0]  ;;  %v2718_v32 = vor.u32 %v3998_v19, %v2717_v17 }
  0x9d   :  { %1908 = vmatpush.bf16.msra.mxu2 %v3054_v27  ;;  %v2973_v24 = vld [vmem:[#allocation3 + $0x208] sm:$0xf]  ;;  %v4062_v26 = vld [vmem:[#allocation3 + $0x214] sm:$0xf0]  ;;  %v2846_v36 = vor.u32 %v4030_v23, %v2845_v22 }
  0x9e   :  { %1922 = vmatpush.bf16.msra.mxu3 %v3182_v31  ;;  %v3101_v27 = vld [vmem:[#allocation3 + $0x308] sm:$0xf]  ;;  %v4094_v28 = vld [vmem:[#allocation3 + $0x314] sm:$0xf0] }
  0x9f   :  { %1881 = vmatpush.bf16.msra.mxu0 %v2782_v37  ;;  %v3341_v29 = vld [vmem:[#allocation3 + $0x4e8] sm:$0xf]  ;;  %v4154_v30 = vld [vmem:[#allocation3 + $0x4f4] sm:$0xf0]  ;;  %v2974_v37 = vor.u32 %v4062_v26, %v2973_v24  ;;  %v3102_v41 = vor.u32 %v4094_v28, %v3101_v27 }
  0xa0   :  { %1895 = vmatpush.bf16.msra.mxu1 %v2910_v38  ;;  %v3469_v31 = vld [vmem:[#allocation3 + $0x5e8] sm:$0xf]  ;;  %v4186_v33 = vld [vmem:[#allocation3 + $0x5f4] sm:$0xf0]  ;;  %v3342_v42 = vor.u32 %v4154_v30, %v3341_v29 }
  0xa1   :  { %1909 = vmatpush.bf16.msra.mxu2 %v3038_v39  ;;  %v3597_v34 = vld [vmem:[#allocation3 + $0x6e8] sm:$0xf]  ;;  %v4218_v35 = vld [vmem:[#allocation3 + $0x6f4] sm:$0xf0]  ;;  %v3470_v43 = vor.u32 %v4186_v33, %v3469_v31 }
  0xa2   :  { %1923 = vmatpush.bf16.msra.mxu3 %v3166_v46  ;;  %v3725_v38 = vld [vmem:[#allocation3 + $0x7e8] sm:$0xf]  ;;  %v4250_v39 = vld [vmem:[#allocation3 + $0x7f4] sm:$0xf0]  ;;  %v3598_v46 = vor.u32 %v4218_v35, %v3597_v34 }
  0xa3   :  { %1882 = vmatpush.bf16.msra.mxu0 %v2766_v53  ;;  %v3325_v47 = vld [vmem:[#allocation3 + $0x4c8] sm:$0xf]  ;;  %v4150_v49 = vld [vmem:[#allocation3 + $0x4d4] sm:$0xf0]  ;;  %v3726_v51 = vor.u32 %v4250_v39, %v3725_v38 }
  0xa4   :  { %1896 = vmatpush.bf16.msra.mxu1 %v2894_v54  ;;  %v3453_v50 = vld [vmem:[#allocation3 + $0x5c8] sm:$0xf]  ;;  %v4182_v52 = vld [vmem:[#allocation3 + $0x5d4] sm:$0xf0]  ;;  %v3326_v57 = vor.u32 %v4150_v49, %v3325_v47 }
  0xa5   :  { %1910 = vmatpush.bf16.msra.mxu2 %v3022_v55  ;;  %v3581_v53 = vld [vmem:[#allocation3 + $0x6c8] sm:$0xf]  ;;  %v4214_v54 = vld [vmem:[#allocation3 + $0x6d4] sm:$0xf0]  ;;  %v3454_v58 = vor.u32 %v4182_v52, %v3453_v50 }
  0xa6   :  { %1924 = vmatpush.bf16.msra.mxu3 %v3150_v60  ;;  %v3709_v55 = vld [vmem:[#allocation3 + $0x7c8] sm:$0xf]  ;;  %v4246_v56 = vld [vmem:[#allocation3 + $0x7d4] sm:$0xf0]  ;;  %v3582_v60 = vor.u32 %v4214_v54, %v3581_v53 }
  0xa7   :  { %1883 = vmatpush.bf16.msra.mxu0 %v2750_v3  ;;  %v3309_v61 = vld [vmem:[#allocation3 + $0x4a8] sm:$0xf]  ;;  %v4146_v62 = vld [vmem:[#allocation3 + $0x4b4] sm:$0xf0]  ;;  %v3710_v0 = vor.u32 %v4246_v56, %v3709_v55 }
  0xa8   :  { %1897 = vmatpush.bf16.msra.mxu1 %v2878_v4  ;;  %v3437_v63 = vld [vmem:[#allocation3 + $0x5a8] sm:$0xf]  ;;  %v4178_v1 = vld [vmem:[#allocation3 + $0x5b4] sm:$0xf0]  ;;  %v3310_v7 = vor.u32 %v4146_v62, %v3309_v61 }
  0xa9   :  { %1911 = vmatpush.bf16.msra.mxu2 %v3006_v5  ;;  %v3565_v3 = vld [vmem:[#allocation3 + $0x6a8] sm:$0xf]  ;;  %v4210_v4 = vld [vmem:[#allocation3 + $0x6b4] sm:$0xf0]  ;;  %v3438_v8 = vor.u32 %v4178_v1, %v3437_v63 }
  0xaa   :  { %1925 = vmatpush.bf16.msra.mxu3 %v3134_v9  ;;  %v3693_v5 = vld [vmem:[#allocation3 + $0x7a8] sm:$0xf]  ;;  %v4242_v6 = vld [vmem:[#allocation3 + $0x7b4] sm:$0xf0]  ;;  %v3566_v9 = vor.u32 %v4210_v4, %v3565_v3 }
  0xab   :  { %1884 = vmatpush.bf16.msra.mxu0 %v2734_v16  ;;  %v3293_v10 = vld [vmem:[#allocation3 + $0x488] sm:$0xf]  ;;  %v4142_v12 = vld [vmem:[#allocation3 + $0x494] sm:$0xf0]  ;;  %v3694_v14 = vor.u32 %v4242_v6, %v3693_v5 }
  0xac   :  { %1898 = vmatpush.bf16.msra.mxu1 %v2862_v20  ;;  %v3421_v13 = vld [vmem:[#allocation3 + $0x588] sm:$0xf]  ;;  %v4174_v15 = vld [vmem:[#allocation3 + $0x594] sm:$0xf0] }
  0xad   :  { %1912 = vmatpush.bf16.msra.mxu2 %v2990_v21  ;;  %v3549_v16 = vld [vmem:[#allocation3 + $0x688] sm:$0xf]  ;;  %v4206_v17 = vld [vmem:[#allocation3 + $0x694] sm:$0xf0]  ;;  %v3294_v21 = vor.u32 %v4142_v12, %v3293_v10  ;;  %v3422_v22 = vor.u32 %v4174_v15, %v3421_v13  ;;  %v4024_v12 = vld [vmem:[#allocation3 + $0xec] sm:$0xf] }
  0xae   :  { %1926 = vmatpush.bf16.msra.mxu3 %v3118_v25  ;;  %v3677_v19 = vld [vmem:[#allocation3 + $0x788] sm:$0xf]  ;;  %v4238_v20 = vld [vmem:[#allocation3 + $0x794] sm:$0xf0]  ;;  %v3550_v23 = vor.u32 %v4206_v17, %v3549_v16  ;;  %v2831_v13 = vld [vmem:[#allocation3 + $0xf8] sm:$0xf0] }
  0xaf   :  { %1885 = vmatpush.bf16.msra.mxu0 %v2718_v32  ;;  %v3277_v24 = vld [vmem:[#allocation3 + $0x468] sm:$0xf]  ;;  %v4138_v25 = vld [vmem:[#allocation3 + $0x474] sm:$0xf0]  ;;  %v3678_v27 = vor.u32 %v4238_v20, %v3677_v19  ;;  %v2959_v16 = vld [vmem:[#allocation3 + $0x1f8] sm:$0xf0] }
  0xb0   :  { %1899 = vmatpush.bf16.msra.mxu1 %v2846_v36  ;;  %v3405_v26 = vld [vmem:[#allocation3 + $0x568] sm:$0xf]  ;;  %v4170_v28 = vld [vmem:[#allocation3 + $0x574] sm:$0xf0]  ;;  %v3278_v33 = vor.u32 %v4138_v25, %v3277_v24  ;;  %v4088_v17 = vld [vmem:[#allocation3 + $0x2ec] sm:$0xf]  ;;  %v2834_v25 = vor.u32 %v4024_v12, %v2831_v13 }
  0xb1   :  { %1913 = vmatpush.bf16.msra.mxu2 %v2974_v37  ;;  %v3533_v29 = vld [vmem:[#allocation3 + $0x668] sm:$0xf]  ;;  %v4202_v30 = vld [vmem:[#allocation3 + $0x674] sm:$0xf0]  ;;  %v3406_v34 = vor.u32 %v4170_v28, %v3405_v26  ;;  %v3087_v19 = vld [vmem:[#allocation3 + $0x2f8] sm:$0xf0] }
  0xb2   :  { %1927 = vmatpush.bf16.msra.mxu3 %v3102_v41  ;;  %1886 = vmatmul.bf16.vlgmr.msra.gmra.mxu0 %v4438_v59  ;;  %v3661_v31 = vld [vmem:[#allocation3 + $0x768] sm:$0xf]  ;;  %v4234_v32 = vld [vmem:[#allocation3 + $0x774] sm:$0xf0]  ;;  %v3534_v35 = vor.u32 %v4202_v30, %v3533_v29  ;;  %v4020_v28 = vld [vmem:[#allocation3 + $0xcc] sm:$0xf] }
  0xb3   :  { %1934 = vmatpush.bf16.msrb.mxu0 %v3342_v42  ;;  %1900 = vmatmul.bf16.vlgmr.msra.gmra.mxu1 %v4456_v11  ;;  %v3261_v36 = vld [vmem:[#allocation3 + $0x448] sm:$0xf]  ;;  %v4134_v37 = vld [vmem:[#allocation3 + $0x454] sm:$0xf0]  ;;  %v3662_v39 = vor.u32 %v4234_v32, %v3661_v31  ;;  %v2815_v29 = vld [vmem:[#allocation3 + $0xd8] sm:$0xf0] }
  0xb4   :  { %1948 = vmatpush.bf16.msrb.mxu1 %v3470_v43  ;;  %1914 = vmatmul.bf16.vlgmr.msra.gmra.mxu2 %v4443_v2  ;;  %v3389_v38 = vld [vmem:[#allocation3 + $0x548] sm:$0xf]  ;;  %v4166_v41 = vld [vmem:[#allocation3 + $0x554] sm:$0xf0]  ;;  %v3262_v49 = vor.u32 %v4134_v37, %v3261_v36  ;;  %v4052_v30 = vld [vmem:[#allocation3 + $0x1cc] sm:$0xf]  ;;  %v2818_v37 = vor.u32 %v4020_v28, %v2815_v29 }
  0xb5   :  { %1962 = vmatpush.bf16.msrb.mxu2 %v3598_v46  ;;  %1928 = vmatmul.bf16.vlgmr.msra.gmra.mxu3 %v4461_v18  ;;  %v3517_v42 = vld [vmem:[#allocation3 + $0x648] sm:$0xf]  ;;  %v4198_v43 = vld [vmem:[#allocation3 + $0x654] sm:$0xf0]  ;;  %v3390_v50 = vor.u32 %v4166_v41, %v3389_v38  ;;  %v2943_v32 = vld [vmem:[#allocation3 + $0x1d8] sm:$0xf0] }
  0xb6   :  { %1976 = vmatpush.bf16.msrb.mxu3 %v3726_v51  ;;  %v3645_v46 = vld [vmem:[#allocation3 + $0x748] sm:$0xf]  ;;  %v4230_v47 = vld [vmem:[#allocation3 + $0x754] sm:$0xf0]  ;;  %v3518_v51 = vor.u32 %v4198_v43, %v3517_v42  ;;  %v3199_v36 = vld [vmem:[#allocation3 + $0x3d8] sm:$0xf0]  ;;  %v2946_v38 = vor.u32 %v4052_v30, %v2943_v32 }
  0xb7   :  { %1935 = vmatpush.bf16.msrb.mxu0 %v3326_v57  ;;  %v3245_v52 = vld [vmem:[#allocation3 + $0x428] sm:$0xf]  ;;  %v4130_v53 = vld [vmem:[#allocation3 + $0x434] sm:$0xf0]  ;;  %v3646_v55 = vor.u32 %v4230_v47, %v3645_v46  ;;  %v4016_v41 = vld [vmem:[#allocation3 + $0xac] sm:$0xf] }
  0xb8   :  { %1949 = vmatpush.bf16.msrb.mxu1 %v3454_v58  ;;  %v3373_v54 = vld [vmem:[#allocation3 + $0x528] sm:$0xf]  ;;  %v4162_v56 = vld [vmem:[#allocation3 + $0x534] sm:$0xf0]  ;;  %v3246_v62 = vor.u32 %v4130_v53, %v3245_v52  ;;  %v2799_v42 = vld [vmem:[#allocation3 + $0xb8] sm:$0xf0] }
  0xb9   :  { %1963 = vmatpush.bf16.msrb.mxu2 %v3582_v60  ;;  %v3501_v57 = vld [vmem:[#allocation3 + $0x628] sm:$0xf]  ;;  %v4194_v58 = vld [vmem:[#allocation3 + $0x634] sm:$0xf0]  ;;  %v3374_v1 = vor.u32 %v4162_v56, %v3373_v54  ;;  %v4048_v43 = vld [vmem:[#allocation3 + $0x1ac] sm:$0xf]  ;;  %v2802_v53 = vor.u32 %v4016_v41, %v2799_v42 }
  0xba   :  { %1977 = vmatpush.bf16.msrb.mxu3 %v3710_v0  ;;  %v3629_v60 = vld [vmem:[#allocation3 + $0x728] sm:$0xf]  ;;  %v4226_v61 = vld [vmem:[#allocation3 + $0x734] sm:$0xf0]  ;;  %v3502_v3 = vor.u32 %v4194_v58, %v3501_v57  ;;  %v2927_v47 = vld [vmem:[#allocation3 + $0x1b8] sm:$0xf0] }
  0xbb   :  { %1936 = vmatpush.bf16.msrb.mxu0 %v3310_v7  ;;  %v3229_v63 = vld [vmem:[#allocation3 + $0x408] sm:$0xf]  ;;  %v4126_v0 = vld [vmem:[#allocation3 + $0x414] sm:$0xf0]  ;;  %v3630_v7 = vor.u32 %v4226_v61, %v3629_v60  ;;  %v3183_v52 = vld [vmem:[#allocation3 + $0x3b8] sm:$0xf0]  ;;  %v2930_v54 = vor.u32 %v4048_v43, %v2927_v47 }
  0xbc   :  { %1950 = vmatpush.bf16.msrb.mxu1 %v3438_v8  ;;  %v3357_v4 = vld [vmem:[#allocation3 + $0x508] sm:$0xf]  ;;  %v4158_v5 = vld [vmem:[#allocation3 + $0x514] sm:$0xf0]  ;;  %v3230_v15 = vor.u32 %v4126_v0, %v3229_v63  ;;  %v4012_v56 = vld [vmem:[#allocation3 + $0x8c] sm:$0xf] }
  0xbd   :  { %1964 = vmatpush.bf16.msrb.mxu2 %v3566_v9  ;;  %v3485_v6 = vld [vmem:[#allocation3 + $0x608] sm:$0xf]  ;;  %v4190_v8 = vld [vmem:[#allocation3 + $0x614] sm:$0xf0]  ;;  %v3358_v20 = vor.u32 %v4158_v5, %v3357_v4  ;;  %v2783_v57 = vld [vmem:[#allocation3 + $0x98] sm:$0xf0]  ;;  %v4517_v4 = vpop.f32.mrf.mxu0 }
  0xbe   :  { %1978 = vmatpush.bf16.msrb.mxu3 %v3694_v14  ;;  %v3613_v9 = vld [vmem:[#allocation3 + $0x708] sm:$0xf]  ;;  %v4222_v10 = vld [vmem:[#allocation3 + $0x714] sm:$0xf0]  ;;  %v4056_v14 = vld [vmem:[#allocation3 + $0x1ec] sm:$0xf] }
  0xbf   :  { %1937 = vmatpush.bf16.msrb.mxu0 %v3294_v21  ;;  %v3486_v21 = vor.u32 %v4190_v8, %v3485_v6  ;;  %v3614_v24 = vor.u32 %v4222_v10, %v3613_v9  ;;  %v2962_v26 = vor.u32 %v4056_v14, %v2959_v16  ;;  %v4044_v58 = vld [vmem:[#allocation3 + $0x18c] sm:$0xf]  ;;  %v2911_v61 = vld [vmem:[#allocation3 + $0x198] sm:$0xf0]  ;;  %v4519_v10 = vpop.f32.mrf.mxu1 }
  0xc0   :  { %1951 = vmatpush.bf16.msrb.mxu1 %v3422_v22  ;;  %v4120_v22 = vld [vmem:[#allocation3 + $0x3ec] sm:$0xf]  ;;  %v3039_v63 = vld [vmem:[#allocation3 + $0x298] sm:$0xf0]  ;;  %v2914_v5 = vor.u32 %v4044_v58, %v2911_v61 }
  0xc1   :  { %1965 = vmatpush.bf16.msrb.mxu2 %v3550_v23  ;;  %v3215_v23 = vld [vmem:[#allocation3 + $0x3f8] sm:$0xf0]  ;;  %v4108_v0 = vld [vmem:[#allocation3 + $0x38c] sm:$0xf] }
  0xc2   :  { %1979 = vmatpush.bf16.msrb.mxu3 %v3678_v27  ;;  %v3090_v27 = vor.u32 %v4088_v17, %v3087_v19  ;;  %v3218_v31 = vor.u32 %v4120_v22, %v3215_v23  ;;  %v2767_v8 = vld [vmem:[#allocation3 + $0x78] sm:$0xf0]  ;;  %v4040_v9 = vld [vmem:[#allocation3 + $0x16c] sm:$0xf] }
  0xc3   :  { %1938 = vmatpush.bf16.msrb.mxu0 %v3278_v33  ;;  %v4084_v33 = vld [vmem:[#allocation3 + $0x2cc] sm:$0xf]  ;;  %v2895_v13 = vld [vmem:[#allocation3 + $0x178] sm:$0xf0] }
  0xc4   :  { %1952 = vmatpush.bf16.msrb.mxu1 %v3406_v34  ;;  %v3071_v34 = vld [vmem:[#allocation3 + $0x2d8] sm:$0xf0]  ;;  %v4072_v14 = vld [vmem:[#allocation3 + $0x26c] sm:$0xf] }
  0xc5   :  { %1966 = vmatpush.bf16.msrb.mxu2 %v3534_v35  ;;  %v4116_v35 = vld [vmem:[#allocation3 + $0x3cc] sm:$0xf]  ;;  %v3151_v17 = vld [vmem:[#allocation3 + $0x378] sm:$0xf0] }
  0xc6   :  { %1980 = vmatpush.bf16.msrb.mxu3 %v3662_v39  ;;  %v3074_v39 = vor.u32 %v4084_v33, %v3071_v34  ;;  %v3202_v46 = vor.u32 %v4116_v35, %v3199_v36  ;;  %v4104_v16 = vld [vmem:[#allocation3 + $0x36c] sm:$0xf]  ;;  %v2751_v23 = vld [vmem:[#allocation3 + $0x58] sm:$0xf0]  ;;  %v4523_v33 = vpop.f32.mrf.mxu3 }
  0xc7   :  { %1939 = vmatpush.bf16.msrb.mxu0 %v3262_v49  ;;  %v4080_v49 = vld [vmem:[#allocation3 + $0x2ac] sm:$0xf]  ;;  %v3007_v28 = vld [vmem:[#allocation3 + $0x258] sm:$0xf0] }
  0xc8   :  { %1953 = vmatpush.bf16.msrb.mxu1 %v3390_v50  ;;  %v3055_v50 = vld [vmem:[#allocation3 + $0x2b8] sm:$0xf0]  ;;  %v4004_v22 = vld [vmem:[#allocation3 + $0x4c] sm:$0xf] }
  0xc9   :  { %1967 = vmatpush.bf16.msrb.mxu2 %v3518_v51  ;;  %v4112_v51 = vld [vmem:[#allocation3 + $0x3ac] sm:$0xf]  ;;  %v3135_v30 = vld [vmem:[#allocation3 + $0x358] sm:$0xf0]  ;;  %v2754_v32 = vor.u32 %v4004_v22, %v2751_v23 }
  0xca   :  { %1981 = vmatpush.bf16.msrb.mxu3 %v3646_v55  ;;  %v3058_v55 = vor.u32 %v4080_v49, %v3055_v50  ;;  %v3186_v60 = vor.u32 %v4112_v51, %v3183_v52  ;;  %v4100_v29 = vld [vmem:[#allocation3 + $0x34c] sm:$0xf]  ;;  %v2863_v41 = vld [vmem:[#allocation3 + $0x138] sm:$0xf0]  ;;  %v4527_v50 = vpop.f32.mrf.mxu1 }
  0xcb   :  { %1940 = vmatpush.bf16.msrb.mxu0 %v3246_v62  ;;  %v4076_v62 = vld [vmem:[#allocation3 + $0x28c] sm:$0xf]  ;;  %v2991_v43 = vld [vmem:[#allocation3 + $0x238] sm:$0xf0] }
  0xcc   :  { %1954 = vmatpush.bf16.msrb.mxu1 %v3374_v1  ;;  %v3167_v1 = vld [vmem:[#allocation3 + $0x398] sm:$0xf0]  ;;  %v3042_v6 = vor.u32 %v4076_v62, %v3039_v63  ;;  %v4000_v36 = vld [vmem:[#allocation3 + $0x2c] sm:$0xf] }
  0xcd   :  { %1968 = vmatpush.bf16.msrb.mxu2 %v3502_v3  ;;  %v2786_v3 = vor.u32 %v4012_v56, %v2783_v57  ;;  %v3170_v12 = vor.u32 %v4108_v0, %v3167_v1  ;;  %v4064_v42 = vld [vmem:[#allocation3 + $0x22c] sm:$0xf]  ;;  %v3119_v49 = vld [vmem:[#allocation3 + $0x338] sm:$0xf0] }
  0xce   :  { %1982 = vmatpush.bf16.msrb.mxu3 %v3630_v7  ;;  %v4008_v7 = vld [vmem:[#allocation3 + $0x6c] sm:$0xf]  ;;  %v2847_v57 = vld [vmem:[#allocation3 + $0x118] sm:$0xf0] }
  0xcf   :  { %1941 = vmatpush.bf16.msrb.mxu0 %v3230_v15  ;;  %v3023_v15 = vld [vmem:[#allocation3 + $0x278] sm:$0xf0]  ;;  %v2770_v19 = vor.u32 %v4008_v7, %v2767_v8  ;;  %v4096_v47 = vld [vmem:[#allocation3 + $0x32c] sm:$0xf] }
  0xd0   :  { %1955 = vmatpush.bf16.msrb.mxu1 %v3358_v20  ;;  %v2898_v20 = vor.u32 %v4040_v9, %v2895_v13  ;;  %v3996_v52 = vld [vmem:[#allocation3 + $0xc] sm:$0xf]  ;;  %v2975_v61 = vld [vmem:[#allocation3 + $0x218] sm:$0xf0] }
  0xd1   :  { %1969 = vmatpush.bf16.msrb.mxu2 %v3486_v21  ;;  %v3026_v21 = vor.u32 %v4072_v14, %v3023_v15  ;;  %v4028_v56 = vld [vmem:[#allocation3 + $0x10c] sm:$0xf]  ;;  %v3103_v63 = vld [vmem:[#allocation3 + $0x318] sm:$0xf0] }
  0xd2   :  { %1983 = vmatpush.bf16.msrb.mxu3 %v3614_v24  ;;  %1942 = vmatmul.bf16.vlgmr.msrb.gmra.mxu0 %v4489_v40  ;;  %v4036_v24 = vld [vmem:[#allocation3 + $0x14c] sm:$0xf]  ;;  %v3343_v1 = vld [vmem:[#allocation3 + $0x4f8] sm:$0xf0]  ;;  %v2850_v9 = vor.u32 %v4028_v56, %v2847_v57 }
  0xd3   :  { %1990 = vmatpush.bf16.msra.mxu0 %v2834_v25  ;;  %1956 = vmatmul.bf16.vlgmr.msrb.gmra.mxu1 %v4493_v45  ;;  %v3154_v25 = vor.u32 %v4104_v16, %v3151_v17  ;;  %v4060_v58 = vld [vmem:[#allocation3 + $0x20c] sm:$0xf]  ;;  %v3599_v8 = vld [vmem:[#allocation3 + $0x6f8] sm:$0xf0] }
  0xd4   :  { %2004 = vmatpush.bf16.msra.mxu1 %v2962_v26  ;;  %1970 = vmatmul.bf16.vlgmr.msrb.gmra.mxu2 %v4491_v44  ;;  %v2879_v26 = vld [vmem:[#allocation3 + $0x158] sm:$0xf0]  ;;  %v4092_v62 = vld [vmem:[#allocation3 + $0x30c] sm:$0xf] }
  0xd5   :  { %2018 = vmatpush.bf16.msra.mxu2 %v3090_v27  ;;  %1984 = vmatmul.bf16.vlgmr.msrb.gmra.mxu3 %v4495_v48  ;;  %v4068_v27 = vld [vmem:[#allocation3 + $0x24c] sm:$0xf]  ;;  %v2882_v34 = vor.u32 %v4036_v24, %v2879_v26  ;;  %v3727_v14 = vld [vmem:[#allocation3 + $0x7f8] sm:$0xf0]  ;;  %v3106_v16 = vor.u32 %v4092_v62, %v3103_v63 }
  0xd6   :  { %2032 = vmatpush.bf16.msra.mxu3 %v3218_v31  ;;  %v4521_v31 = vpop.f32.mrf.mxu2  ;;  %v3010_v35 = vor.u32 %v4068_v27, %v3007_v28  ;;  %v4152_v0 = vld [vmem:[#allocation3 + $0x4ec] sm:$0xf]  ;;  %v3327_v23 = vld [vmem:[#allocation3 + $0x4d8] sm:$0xf0] }
  0xd7   :  { %1991 = vmatpush.bf16.msra.mxu0 %v2818_v37  ;;  %v2735_v37 = vld [vmem:[#allocation3 + $0x38] sm:$0xf0]  ;;  %v4216_v7 = vld [vmem:[#allocation3 + $0x6ec] sm:$0xf]  ;;  %v3346_v17 = vor.u32 %v4152_v0, %v3343_v1 }
  0xd8   :  { %2005 = vmatpush.bf16.msra.mxu1 %v2946_v38  ;;  %v4032_v38 = vld [vmem:[#allocation3 + $0x12c] sm:$0xf]  ;;  %v2738_v51 = vor.u32 %v4000_v36, %v2735_v37  ;;  %v3455_v26 = vld [vmem:[#allocation3 + $0x5d8] sm:$0xf0] }
  0xd9   :  { %2019 = vmatpush.bf16.msra.mxu2 %v3074_v39  ;;  %v3138_v39 = vor.u32 %v4100_v29, %v3135_v30  ;;  %v4248_v13 = vld [vmem:[#allocation3 + $0x7ec] sm:$0xf]  ;;  %v3583_v28 = vld [vmem:[#allocation3 + $0x6d8] sm:$0xf0] }
  0xda   :  { %2033 = vmatpush.bf16.msra.mxu3 %v3202_v46  ;;  %v4525_v46 = vpop.f32.mrf.mxu0  ;;  %v4148_v22 = vld [vmem:[#allocation3 + $0x4cc] sm:$0xf]  ;;  %v3295_v57 = vld [vmem:[#allocation3 + $0x498] sm:$0xf0] }
  0xdb   :  { %1992 = vmatpush.bf16.msra.mxu0 %v2802_v53  ;;  %v2719_v53 = vld [vmem:[#allocation3 + $0x18] sm:$0xf0]  ;;  %v4180_v24 = vld [vmem:[#allocation3 + $0x5cc] sm:$0xf] }
  0xdc   :  { %2006 = vmatpush.bf16.msra.mxu1 %v2930_v54  ;;  %v2866_v54 = vor.u32 %v4032_v38, %v2863_v41  ;;  %v4212_v27 = vld [vmem:[#allocation3 + $0x6cc] sm:$0xf]  ;;  %v3458_v36 = vor.u32 %v4180_v24, %v3455_v26  ;;  %v3679_v0 = vld [vmem:[#allocation3 + $0x798] sm:$0xf0] }
  0xdd   :  { %2020 = vmatpush.bf16.msra.mxu2 %v3058_v55  ;;  %v2994_v55 = vor.u32 %v4064_v42, %v2991_v43  ;;  %v4244_v30 = vld [vmem:[#allocation3 + $0x7cc] sm:$0xf]  ;;  %v3586_v37 = vor.u32 %v4212_v27, %v3583_v28  ;;  %v3439_v43 = vld [vmem:[#allocation3 + $0x5b8] sm:$0xf0] }
  0xde   :  { %2034 = vmatpush.bf16.msra.mxu3 %v3186_v60  ;;  %v3122_v60 = vor.u32 %v4096_v47, %v3119_v49  ;;  %v4529_v15 = vpop.f32.mrf.mxu2  ;;  %v4144_v38 = vld [vmem:[#allocation3 + $0x4ac] sm:$0xf]  ;;  %v3567_v49 = vld [vmem:[#allocation3 + $0x6b8] sm:$0xf0] }
  0xdf   :  { %1993 = vmatpush.bf16.msra.mxu0 %v2786_v3  ;;  %v4184_v3 = vld [vmem:[#allocation3 + $0x5ec] sm:$0xf]  ;;  %v3263_v26 = vld [vmem:[#allocation3 + $0x458] sm:$0xf0] }
  0xe0   :  { %2007 = vmatpush.bf16.msra.mxu1 %v2914_v5  ;;  %v2722_v5 = vor.u32 %v3996_v52, %v2719_v53  ;;  %v4176_v41 = vld [vmem:[#allocation3 + $0x5ac] sm:$0xf]  ;;  %v3695_v52 = vld [vmem:[#allocation3 + $0x7b8] sm:$0xf0] }
  0xe1   :  { %2021 = vmatpush.bf16.msra.mxu2 %v3042_v6  ;;  %v3471_v6 = vld [vmem:[#allocation3 + $0x5f8] sm:$0xf0]  ;;  %v4208_v47 = vld [vmem:[#allocation3 + $0x6ac] sm:$0xf] }
  0xe2   :  { %2035 = vmatpush.bf16.msra.mxu3 %v3170_v12  ;;  %v2978_v12 = vor.u32 %v4060_v58, %v2975_v61  ;;  %v4533_v29 = vpop.f32.mrf.mxu0  ;;  %v4140_v56 = vld [vmem:[#allocation3 + $0x48c] sm:$0xf]  ;;  %v3423_v61 = vld [vmem:[#allocation3 + $0x598] sm:$0xf0] }
  0xe3   :  { %1994 = vmatpush.bf16.msra.mxu0 %v2770_v19  ;;  %v4531_v19 = vpop.f32.mrf.mxu3  ;;  %v4204_v62 = vld [vmem:[#allocation3 + $0x68c] sm:$0xf] }
  0xe4   :  { %2008 = vmatpush.bf16.msra.mxu1 %v2898_v20  ;;  %v3474_v20 = vor.u32 %v4184_v3, %v3471_v6  ;;  %v4136_v6 = vld [vmem:[#allocation3 + $0x46c] sm:$0xf] }
  0xe5   :  { %2022 = vmatpush.bf16.msra.mxu2 %v3026_v21  ;;  %v3602_v21 = vor.u32 %v4216_v7, %v3599_v8  ;;  %v3279_v7 = vld [vmem:[#allocation3 + $0x478] sm:$0xf0]  ;;  %v4168_v8 = vld [vmem:[#allocation3 + $0x56c] sm:$0xf] }
  0xe6   :  { %2036 = vmatpush.bf16.msra.mxu3 %v3154_v25  ;;  %v3730_v25 = vor.u32 %v4248_v13, %v3727_v14  ;;  %v4541_v58 = vpop.f32.mrf.mxu2  ;;  %v3407_v13 = vld [vmem:[#allocation3 + $0x578] sm:$0xf0]  ;;  %v4200_v14 = vld [vmem:[#allocation3 + $0x66c] sm:$0xf] }
  0xe7   :  { %1995 = vmatpush.bf16.msra.mxu0 %v2754_v32  ;;  %v3711_v32 = vld [vmem:[#allocation3 + $0x7d8] sm:$0xf0]  ;;  %v4164_v27 = vld [vmem:[#allocation3 + $0x54c] sm:$0xf] }
  0xe8   :  { %2009 = vmatpush.bf16.msra.mxu1 %v2882_v34  ;;  %v4535_v34 = vpop.f32.mrf.mxu1  ;;  %v3714_v42 = vor.u32 %v4244_v30, %v3711_v32  ;;  %v3391_v30 = vld [vmem:[#allocation3 + $0x558] sm:$0xf0]  ;;  %v4196_v32 = vld [vmem:[#allocation3 + $0x64c] sm:$0xf] }
  0xe9   :  { %2023 = vmatpush.bf16.msra.mxu2 %v3010_v35  ;;  %v3330_v35 = vor.u32 %v4148_v22, %v3327_v23  ;;  %v3282_v22 = vor.u32 %v4136_v6, %v3279_v7  ;;  %v3410_v23 = vor.u32 %v4168_v8, %v3407_v13  ;;  %v4156_v6 = vld [vmem:[#allocation3 + $0x50c] sm:$0xf]  ;;  %v3359_v7 = vld [vmem:[#allocation3 + $0x518] sm:$0xf0] }
  0xea   :  { %2037 = vmatpush.bf16.msra.mxu3 %v3138_v39  ;;  %v3311_v39 = vld [vmem:[#allocation3 + $0x4b8] sm:$0xf0]  ;;  %v4545_v1 = vpop.f32.mrf.mxu0  ;;  %v4188_v13 = vld [vmem:[#allocation3 + $0x60c] sm:$0xf] }
  0xeb   :  { %1996 = vmatpush.bf16.msra.mxu0 %v2738_v51  ;;  %v4240_v51 = vld [vmem:[#allocation3 + $0x7ac] sm:$0xf]  ;;  %v3314_v53 = vor.u32 %v4144_v38, %v3311_v39  ;;  %v4543_v63 = vpop.f32.mrf.mxu3 }
  0xec   :  { %2010 = vmatpush.bf16.msra.mxu1 %v2866_v54  ;;  %v3442_v54 = vor.u32 %v4176_v41, %v3439_v43  ;;  %v3394_v43 = vor.u32 %v4164_v27, %v3391_v30 }
  0xed   :  { %2024 = vmatpush.bf16.msra.mxu2 %v2994_v55  ;;  %v3570_v55 = vor.u32 %v4208_v47, %v3567_v49 }
  0xee   :  { %2038 = vmatpush.bf16.msra.mxu3 %v3122_v60  ;;  %v3698_v60 = vor.u32 %v4240_v51, %v3695_v52  ;;  %v4555_v39 = vpop.f32.mrf.mxu2  ;;  %v4128_v51 = vld [vmem:[#allocation3 + $0x42c] sm:$0xf]  ;;  %v3247_v52 = vld [vmem:[#allocation3 + $0x438] sm:$0xf0] }
  0xef   :  { %1997 = vmatpush.bf16.msra.mxu0 %v2722_v5 }
  0xf0   :  { %2011 = vmatpush.bf16.msra.mxu1 %v2850_v9  ;;  %v4547_v9 = vpop.f32.mrf.mxu1 }
  0xf1   :  { %2025 = vmatpush.bf16.msra.mxu2 %v2978_v12 }
  0xf2   :  { %2039 = vmatpush.bf16.msra.mxu3 %v3106_v16  ;;  %1998 = vmatmul.bf16.vlgmr.msra.gmra.mxu0 %v4438_v59  ;;  %v3551_v59 = vld [vmem:[#allocation3 + $0x698] sm:$0xf0]  ;;  %v1775_v49 = vpop.f32.mrf.mxu0 }
  0xf3   :  { %2046 = vmatpush.bf16.msrb.mxu0 %v3346_v17  ;;  %2012 = vmatmul.bf16.vlgmr.msra.gmra.mxu1 %v4456_v11  ;;  %v3298_v11 = vor.u32 %v4140_v56, %v3295_v57  ;;  %v3554_v5 = vor.u32 %v4204_v62, %v3551_v59  ;;  %v3535_v16 = vld [vmem:[#allocation3 + $0x678] sm:$0xf0]  ;;  %v4232_v17 = vld [vmem:[#allocation3 + $0x76c] sm:$0xf] }
  0xf4   :  { %2060 = vmatpush.bf16.msrb.mxu1 %v3474_v20  ;;  %2026 = vmatmul.bf16.vlgmr.msra.gmra.mxu2 %v4443_v2  ;;  %v4172_v2 = vld [vmem:[#allocation3 + $0x58c] sm:$0xf]  ;;  %v3663_v20 = vld [vmem:[#allocation3 + $0x778] sm:$0xf0]  ;;  %v3538_v24 = vor.u32 %v4200_v14, %v3535_v16 }
  0xf5   :  { %2074 = vmatpush.bf16.msrb.mxu2 %v3602_v21  ;;  %2040 = vmatmul.bf16.vlgmr.msra.gmra.mxu3 %v4461_v18  ;;  %v4236_v18 = vld [vmem:[#allocation3 + $0x78c] sm:$0xf]  ;;  %v3426_v3 = vor.u32 %v4172_v2, %v3423_v61  ;;  %v4552_v21 = vld [vmem:[%s4606_s2] sm:$0xf]  ;;  %v3666_v28 = vor.u32 %v4232_v17, %v3663_v20 }
  0xf6   :  { %2088 = vmatpush.bf16.msrb.mxu3 %v3730_v25  ;;  %v3682_v12 = vor.u32 %v4236_v18, %v3679_v0  ;;  %v4132_v25 = vld [vmem:[#allocation3 + $0x44c] sm:$0xf]  ;;  %v326_v38 = vperm.slane %v4552_v21, 0  ;;  %v3375_v56 = vld [vmem:[#allocation3 + $0x538] sm:$0xf0]  ;;  %v327_v61 = vperm.slane %v4552_v21, 1  ;;  %v3250_v18 = vor.u32 %v4128_v51, %v3247_v52 }
  0xf7   :  { %2047 = vmatpush.bf16.msrb.mxu0 %v3330_v35  ;;  %v3519_v35 = vld [vmem:[#allocation3 + $0x658] sm:$0xf0]  ;;  %v3266_v41 = vor.u32 %v4132_v25, %v3263_v26  ;;  %v4192_v57 = vld [vmem:[#allocation3 + $0x62c] sm:$0xf]  ;;  %v4282_v25 = vld [vmem:[#allocation5 + $0xf4] sm:$0xf0]  ;;  %v1803_v26 = vpop.f32.mrf.mxu2 }
  0xf8   :  { %2061 = vmatpush.bf16.msrb.mxu1 %v3458_v36  ;;  %v4228_v36 = vld [vmem:[#allocation3 + $0x74c] sm:$0xf]  ;;  %v3522_v47 = vor.u32 %v4196_v32, %v3519_v35  ;;  %v3503_v2 = vld [vmem:[#allocation3 + $0x638] sm:$0xf0]  ;;  %v1776_v17 = vadd.f32 %v1775_v49, %v327_v61  ;;  %v3845_v49 = vld [vmem:[#allocation5 + $0xe0] sm:$0xf] }
  0xf9   :  { %2075 = vmatpush.bf16.msrb.mxu2 %v3586_v37  ;;  %v3647_v37 = vld [vmem:[#allocation3 + $0x758] sm:$0xf0]  ;;  %v4224_v62 = vld [vmem:[#allocation3 + $0x72c] sm:$0xf]  ;;  %v4280_v51 = vld [vmem:[#allocation5 + $0xe4] sm:$0xf0] }
  0xfa   :  { %2089 = vmatpush.bf16.msrb.mxu3 %v3714_v42  ;;  %v4557_v42 = vpop.f32.mrf.mxu3  ;;  %v3631_v59 = vld [vmem:[#allocation3 + $0x738] sm:$0xf0]  ;;  %v4124_v0 = vld [vmem:[#allocation3 + $0x40c] sm:$0xf] }
  0xfb   :  { %2048 = vmatpush.bf16.msrb.mxu0 %v3314_v53  ;;  %v4160_v53 = vld [vmem:[#allocation3 + $0x52c] sm:$0xf]  ;;  %v3487_v14 = vld [vmem:[#allocation3 + $0x618] sm:$0xf0] }
  0xfc   :  { %2062 = vmatpush.bf16.msrb.mxu1 %v3442_v54  ;;  %v1666_v54 = vadd.f32 %v4525_v46, %v326_v38  ;;  %v3231_v46 = vld [vmem:[#allocation3 + $0x418] sm:$0xf0]  ;;  %v4220_v16 = vld [vmem:[#allocation3 + $0x70c] sm:$0xf] }
  0xfd   :  { %2076 = vmatpush.bf16.msrb.mxu2 %v3570_v55  ;;  %v3650_v55 = vor.u32 %v4228_v36, %v3647_v37  ;;  %v3615_v20 = vld [vmem:[#allocation3 + $0x718] sm:$0xf0] }
  0xfe   :  { %2090 = vmatpush.bf16.msrb.mxu3 %v3698_v60  ;;  %v1789_v60 = vpop.f32.mrf.mxu1  ;;  %v1680_v8 = vadd.f32 %v4527_v50, %v1666_v54  ;;  %v3490_v50 = vor.u32 %v4188_v13, %v3487_v14  ;;  %v3618_v35 = vor.u32 %v4220_v16, %v3615_v20  ;;  %v3757_v13 = vld [vmem:[#allocation5 + $0x30] sm:$0xf]  ;;  %v4258_v14 = vld [vmem:[#allocation5 + $0x34] sm:$0xf0] }
  0xff   :  { %2049 = vmatpush.bf16.msrb.mxu0 %v3298_v11  ;;  %v1664_v11 = vadd.f32 %v4517_v4, %v326_v38  ;;  %v3234_v4 = vor.u32 %v4124_v0, %v3231_v46  ;;  %v1790_v37 = vadd.f32 %v1789_v60, %v1776_v17  ;;  %v4278_v60 = vld [vmem:[#allocation5 + $0xd4] sm:$0xf0]  ;;  %v3821_v16 = vld [vmem:[#allocation5 + $0xb0] sm:$0xf] }
 0x100   :  { %2063 = vmatpush.bf16.msrb.mxu1 %v3426_v3  ;;  %v3378_v3 = vor.u32 %v4160_v53, %v3375_v56  ;;  %v1694_v32 = vadd.f32 %v4529_v15, %v1680_v8  ;;  %v3846_v56 = vor.u32 %v4280_v51, %v3845_v49  ;;  %v4274_v17 = vld [vmem:[#allocation5 + $0xb4] sm:$0xf0]  ;;  %v3805_v51 = vld [vmem:[#allocation5 + $0x90] sm:$0xf] }
 0x101   :  { %2077 = vmatpush.bf16.msrb.mxu2 %v3554_v5  ;;  %v3506_v5 = vor.u32 %v4192_v57, %v3503_v2  ;;  %v1678_v27 = vadd.f32 %v4519_v10, %v1664_v11  ;;  %v1804_v54 = vadd.f32 %v1803_v26, %v1790_v37  ;;  %v3773_v57 = vld [vmem:[#allocation5 + $0x50] sm:$0xf]  ;;  %v4262_v2 = vld [vmem:[#allocation5 + $0x54] sm:$0xf0]  ;;  %v3813_v26 = vld [vmem:[#allocation5 + $0xa0] sm:$0xf] }
 0x102   :  { %2091 = vmatpush.bf16.msrb.mxu3 %v3682_v12  ;;  %v3634_v12 = vor.u32 %v4224_v62, %v3631_v59  ;;  %v1817_v30 = vpop.f32.mrf.mxu3  ;;  %v1708_v53 = vadd.f32 %v4531_v19, %v1694_v32  ;;  %v3774_v19 = vor.u32 %v4262_v2, %v3773_v57  ;;  %v1805_v59 = vpop.f32.mrf.mxu2  ;;  %v4254_v49 = vld [vmem:[#allocation5 + $0x14] sm:$0xf0]  ;;  %v4252_v57 = vld [vmem:[#allocation5 + $0x4] sm:$0xf0] }
 0x103   :  { %2050 = vmatpush.bf16.msrb.mxu0 %v3282_v22  ;;  %v3789_v22 = vld [vmem:[#allocation5 + $0x70] sm:$0xf]  ;;  %v1692_v10 = vadd.f32 %v4521_v31, %v1678_v27 }
 0x104   :  { %2064 = vmatpush.bf16.msrb.mxu1 %v3410_v23  ;;  %v4266_v23 = vld [vmem:[#allocation5 + $0x74] sm:$0xf0]  ;;  %v3837_v31 = vld [vmem:[#allocation5 + $0xd0] sm:$0xf] }
 0x105   :  { %2078 = vmatpush.bf16.msrb.mxu2 %v3538_v24  ;;  %v3853_v24 = vld [vmem:[#allocation5 + $0xf0] sm:$0xf]  ;;  %v3790_v36 = vor.u32 %v4266_v23, %v3789_v22  ;;  %v1706_v62 = vadd.f32 %v4523_v33, %v1692_v10  ;;  %v3838_v0 = vor.u32 %v4278_v60, %v3837_v31  ;;  %v4270_v10 = vld [vmem:[#allocation5 + $0x94] sm:$0xf0] }
 0x106   :  { %2092 = vmatpush.bf16.msrb.mxu3 %v3666_v28  ;;  %v3362_v28 = vor.u32 %v4156_v6, %v3359_v7  ;;  %v3854_v38 = vor.u32 %v4282_v25, %v3853_v24  ;;  %v1791_v52 = vpop.f32.mrf.mxu1  ;;  %v3822_v24 = vor.u32 %v4274_v17, %v3821_v16  ;;  %v3749_v25 = vld [vmem:[#allocation5 + $0x20] sm:$0xf]  ;;  %v3806_v60 = vor.u32 %v4270_v10, %v3805_v51  ;;  %v3847_v16 = vld [vmem:[#allocation5 + $0xe8] sm:$0xf0]  ;;  %v4288_v51 = vld [vmem:[#allocation5 + $0x124] sm:$0xf0] }
 0x107   :  { %2051 = vmatpush.bf16.msrb.mxu0 %v3266_v41  ;;  %v1777_v41 = vpop.f32.mrf.mxu0  ;;  %v1720_v46 = vadd.f32 %v4533_v29, %v1706_v62  ;;  %v3758_v29 = vor.u32 %v4258_v14, %v3757_v13  ;;  %v3797_v62 = vld [vmem:[#allocation5 + $0x80] sm:$0xf]  ;;  %v4279_v14 = vld [vmem:[#allocation5 + $0xe4] sm:$0xf] }
 0x108   :  { %2065 = vmatpush.bf16.msrb.mxu1 %v3394_v43  ;;  %v3781_v43 = vld [vmem:[#allocation5 + $0x60] sm:$0xf] }
 0x109   :  { %2079 = vmatpush.bf16.msrb.mxu2 %v3522_v47  ;;  %v4264_v47 = vld [vmem:[#allocation5 + $0x64] sm:$0xf0]  ;;  %v1734_v20 = vadd.f32 %v4535_v34, %v1720_v46 }
 0x10a   :  { %2093 = vmatpush.bf16.msrb.mxu3 %v3650_v55  ;;  %v3782_v15 = vor.u32 %v4264_v47, %v3781_v43  ;;  %v1778_v55 = vadd.f32 %v1777_v41, %v327_v61  ;;  %v1819_v11 = vpop.f32.mrf.mxu3  ;;  %v3741_v47 = vld [vmem:[#allocation5 + $0x10] sm:$0xf] }
 0x10b   :  { %2052 = vmatpush.bf16.msrb.mxu0 %v3250_v18  ;;  %v1722_v18 = vadd.f32 %v4545_v1, %v1708_v53  ;;  %v1748_v32 = vadd.f32 %v4541_v58, %v1734_v20  ;;  %v3909_v53 = vld [vmem:[#allocation5 + $0x160] sm:$0xf] }
 0x10c   :  { %2066 = vmatpush.bf16.msrb.mxu1 %v3378_v3  ;;  %v1792_v61 = vadd.f32 %v1791_v52, %v1778_v55  ;;  %v3765_v3 = vld [vmem:[#allocation5 + $0x40] sm:$0xf]  ;;  %v3742_v55 = vor.u32 %v4254_v49, %v3741_v47  ;;  %v3831_v47 = vld [vmem:[#allocation5 + $0xc8] sm:$0xf0] }
 0x10d   :  { %2080 = vmatpush.bf16.msrb.mxu2 %v3506_v5  ;;  %v3829_v5 = vld [vmem:[#allocation5 + $0xc0] sm:$0xf]  ;;  %v1736_v7 = vadd.f32 %v4547_v9, %v1722_v18  ;;  %v4256_v9 = vld [vmem:[#allocation5 + $0x24] sm:$0xf0]  ;;  %v1762_v58 = vadd.f32 %v4543_v63, %v1748_v32  ;;  %v3775_v32 = vld [vmem:[#allocation5 + $0x58] sm:$0xf0] }
 0x10e   :  { %2094 = vmatpush.bf16.msrb.mxu3 %v3634_v12  ;;  %v1806_v8 = vadd.f32 %v1805_v59, %v1792_v61  ;;  %v3750_v37 = vor.u32 %v4256_v9, %v3749_v25  ;;  %v4265_v59 = vld [vmem:[#allocation5 + $0x74] sm:$0xf]  ;;  %v3901_v61 = vld [vmem:[#allocation5 + $0x150] sm:$0xf]  ;;  %v3877_v49 = vld [vmem:[#allocation5 + $0x120] sm:$0xf] }
 0x10f   :  { %2053 = vmatpush.bf16.msrb.mxu0 %v3234_v4  ;;  %v1831_v6 = vpop.f32.mrf.mxu0  ;;  %v1750_v22 = vadd.f32 %v4555_v39, %v1736_v7  ;;  %v2110_v63 = vmul.f32 0.2, %v1762_v58  ;;  %vm2102_vm1 = vcmp.gt.f32.partialorder %v1762_v58, 0.0 }
 0x110   :  { %2067 = vmatpush.bf16.msrb.mxu1 %v3362_v28  ;;  %v1820_v23 = vadd.f32 %v1819_v11, %v1806_v8  ;;  %v4272_v28 = vld [vmem:[#allocation5 + $0xa4] sm:$0xf0] }
 0x111   :  { %2081 = vmatpush.bf16.msrb.mxu2 %v3490_v50  ;;  %v3917_v50 = vld [vmem:[#allocation5 + $0x170] sm:$0xf]  ;;  %v3814_v43 = vor.u32 %v4272_v28, %v3813_v26  ;;  %v2118_v17 = vsel %vm2102_vm1, %v1762_v58, %v2110_v63  ;;  %v3759_v58 = vld [vmem:[#allocation5 + $0x38] sm:$0xf0] }
 0x112   :  { %2095 = vmatpush.bf16.msrb.mxu3 %v3618_v35  ;;  %2054 = vmatmul.bf16.vlgmr.msrb.gmra.mxu0 %v4489_v40  ;;  %v1818_v40 = vadd.f32 %v1817_v30, %v1804_v54  ;;  %v4298_v30 = vld [vmem:[#allocation5 + $0x174] sm:$0xf0]  ;;  %v1764_v35 = vadd.f32 %v4557_v42, %v1750_v22  ;;  %v3893_v22 = vld [vmem:[#allocation5 + $0x140] sm:$0xf]  ;;  %v3885_v26 = vld [vmem:[#allocation5 + $0x130] sm:$0xf] }
 0x113   :  { %2520 = vmatpush.bf16.msra.mxu0 %v3790_v36  ;;  %2068 = vmatmul.bf16.vlgmr.msrb.gmra.mxu1 %v4493_v45  ;;  %v4260_v45 = vld [vmem:[#allocation5 + $0x44] sm:$0xf0]  ;;  %v3918_v39 = vor.u32 %v4298_v30, %v3917_v50  ;;  %v3850_v50 = vor.u32 %v4279_v14, %v3847_v16  ;;  %v4261_v30 = vld [vmem:[#allocation5 + $0x54] sm:$0xf]  ;;  %v3919_v63 = vld [vmem:[#allocation5 + $0x178] sm:$0xf0] }
 0x114   :  { %2534 = vmatpush.bf16.msra.mxu1 %v3854_v38  ;;  %2082 = vmatmul.bf16.vlgmr.msrb.gmra.mxu2 %v4491_v44  ;;  %v4276_v44 = vld [vmem:[#allocation5 + $0xc4] sm:$0xf0]  ;;  %v3766_v33 = vor.u32 %v4260_v45, %v3765_v3  ;;  %v1832_v1 = vadd.f32 %v1831_v6, %v1818_v40  ;;  %vm2106_vm0 = vcmp.gt.f32.partialorder %v1764_v35, 0.0  ;;  %v2114_v54 = vmul.f32 0.2, %v1764_v35 }
 0x115   :  { %2096 = vmatmul.bf16.vlgmr.msrb.gmra.mxu3 %v4495_v48  ;;  %v1845_v48 = vpop.f32.mrf.mxu1  ;;  %v3830_v12 = vor.u32 %v4276_v44, %v3829_v5  ;;  %2548 = vmatpush.bf16.msra.mxu2 %v3918_v39  ;;  %v3791_v40 = vld [vmem:[#allocation5 + $0x78] sm:$0xf0]  ;;  %v4281_v45 = vld [vmem:[#allocation5 + $0xf4] sm:$0xf]  ;;  %v3778_v39 = vor.u32 %v4261_v30, %v3775_v32  ;;  %v4251_v16 = vld [vmem:[#allocation5 + $0x4] sm:$0xf] }
 0x116   :  { %v1846_v4 = vadd.f32 %v1845_v48, %v1832_v1  ;;  %v3855_v5 = vld [vmem:[#allocation5 + $0xf8] sm:$0xf0]  ;;  %v2122_v46 = vsel %vm2106_vm0, %v1764_v35, %v2114_v54  ;;  %v3794_v8 = vor.u32 %v4265_v59, %v3791_v40  ;;  %v4263_v1 = vld [vmem:[#allocation5 + $0x64] sm:$0xf]  ;;  %v4277_v35 = vld [vmem:[#allocation5 + $0xd4] sm:$0xf] }
 0x117   :  { %2521 = vmatpush.bf16.msra.mxu0 %v3782_v15  ;;  %v1859_v27 = vpop.f32.mrf.mxu2  ;;  %v1833_v34 = vpop.f32.mrf.mxu0  ;;  %v4296_v15 = vld [vmem:[#allocation5 + $0x164] sm:$0xf0]  ;;  %v3858_v13 = vor.u32 %v4281_v45, %v3855_v5  ;;  %v4286_v54 = vld [vmem:[#allocation5 + $0x114] sm:$0xf0]  ;;  %v3815_v59 = vld [vmem:[#allocation5 + $0xa8] sm:$0xf0] }
 0x118   :  { %2535 = vmatpush.bf16.msra.mxu1 %v3846_v56  ;;  %v1873_v36 = vpop.f32.mrf.mxu3  ;;  %v1860_v38 = vadd.f32 %v1859_v27, %v1846_v4  ;;  %v1834_v41 = vadd.f32 %v1833_v34, %v1820_v23  ;;  %v3910_v42 = vor.u32 %v4296_v15, %v3909_v53  ;;  %v3733_v56 = vld [vmem:[#allocation5] sm:$0xf]  ;;  %v4292_v4 = vld [vmem:[#allocation5 + $0x144] sm:$0xf0]  ;;  %v4290_v27 = vld [vmem:[#allocation5 + $0x134] sm:$0xf0] }
 0x119   :  { %v3734_v6 = vor.u32 %v4252_v57, %v3733_v56  ;;  %v3894_v9 = vor.u32 %v4292_v4, %v3893_v22  ;;  %v3839_v34 = vld [vmem:[#allocation5 + $0xd8] sm:$0xf0]  ;;  %v4257_v53 = vld [vmem:[#allocation5 + $0x34] sm:$0xf]  ;;  %v4284_v40 = vld [vmem:[#allocation5 + $0x104] sm:$0xf0] }
 0x11a   :  { %v1874_v2 = vadd.f32 %v1873_v36, %v1860_v38  ;;  %2549 = vmatpush.bf16.msra.mxu2 %v3910_v42  ;;  %v3886_v36 = vor.u32 %v4290_v27, %v3885_v26  ;;  %v4259_v38 = vld [vmem:[#allocation5 + $0x44] sm:$0xf]  ;;  %v3869_v42 = vld [vmem:[#allocation5 + $0x110] sm:$0xf]  ;;  %v3823_v56 = vld [vmem:[#allocation5 + $0xb8] sm:$0xf0] }
 0x11b   :  { %2522 = vmatpush.bf16.msra.mxu0 %v3774_v19  ;;  %v4268_v19 = vld [vmem:[#allocation5 + $0x84] sm:$0xf0]  ;;  %v3870_v57 = vor.u32 %v4286_v54, %v3869_v42  ;;  %v4253_v5 = vld [vmem:[#allocation5 + $0x14] sm:$0xf]  ;;  %v3799_v22 = vld [vmem:[#allocation5 + $0x88] sm:$0xf0] }
 0x11c   :  { %2536 = vmatpush.bf16.msra.mxu1 %v3838_v0  ;;  %v4294_v0 = vld [vmem:[#allocation5 + $0x154] sm:$0xf0]  ;;  %v3798_v7 = vor.u32 %v4268_v19, %v3797_v62  ;;  %vm2103_vm2 = vcmp.gt.f32.partialorder %v1874_v2, 0.0  ;;  %v3751_v62 = vld [vmem:[#allocation5 + $0x28] sm:$0xf0] }
 0x11d   :  { %v1847_v52 = vpop.f32.mrf.mxu1  ;;  %v3902_v44 = vor.u32 %v4294_v0, %v3901_v61  ;;  %v4271_v19 = vld [vmem:[#allocation5 + $0xa4] sm:$0xf]  ;;  %v4297_v0 = vld [vmem:[#allocation5 + $0x174] sm:$0xf]  ;;  %v3903_v4 = vld [vmem:[#allocation5 + $0x158] sm:$0xf0] }
 0x11e   :  { %v1848_v31 = vadd.f32 %v1847_v52, %v1834_v41  ;;  %v3767_v41 = vld [vmem:[#allocation5 + $0x48] sm:$0xf0]  ;;  %v3878_v52 = vor.u32 %v4288_v51, %v3877_v49  ;;  %v3818_v45 = vor.u32 %v4271_v19, %v3815_v59  ;;  %v4291_v30 = vld [vmem:[#allocation5 + $0x144] sm:$0xf]  ;;  %v4285_v42 = vld [vmem:[#allocation5 + $0x114] sm:$0xf] }
 0x11f   :  { %2523 = vmatpush.bf16.msra.mxu0 %v3766_v33  ;;  %v1861_v18 = vpop.f32.mrf.mxu2  ;;  %v2111_v33 = vmul.f32 0.2, %v1874_v2  ;;  %2550 = vmatpush.bf16.msra.mxu2 %v3902_v44  ;;  %v3770_v10 = vor.u32 %v4259_v38, %v3767_v41  ;;  %v3743_v44 = vld [vmem:[#allocation5 + $0x18] sm:$0xf0]  ;;  %v3895_v32 = vld [vmem:[#allocation5 + $0x148] sm:$0xf0] }
 0x120   :  { %2537 = vmatpush.bf16.msra.mxu1 %v3830_v12  ;;  %v1862_v11 = vadd.f32 %v1861_v18, %v1848_v31  ;;  %v1875_v3 = vpop.f32.mrf.mxu3  ;;  %v3783_v12 = vld [vmem:[#allocation5 + $0x68] sm:$0xf0]  ;;  %v3861_v18 = vld [vmem:[#allocation5 + $0x100] sm:$0xf]  ;;  %v3887_v38 = vld [vmem:[#allocation5 + $0x138] sm:$0xf0] }
 0x121   :  { %v3786_v23 = vor.u32 %v4263_v1, %v3783_v12  ;;  %v3862_v61 = vor.u32 %v4284_v40, %v3861_v18  ;;  %v328_v1 = vperm.slane %v4552_v21, 2  ;;  %v3746_v12 = vor.u32 %v4253_v5, %v3743_v44  ;;  %v4287_v49 = vld [vmem:[#allocation5 + $0x124] sm:$0xf]  ;;  %v3879_v51 = vld [vmem:[#allocation5 + $0x128] sm:$0xf0] }
 0x122   :  { %v1876_v48 = vadd.f32 %v1875_v3, %v1862_v11  ;;  %v3922_v3 = vor.u32 %v4297_v0, %v3919_v63  ;;  %v3871_v54 = vld [vmem:[#allocation5 + $0x118] sm:$0xf0] }
 0x123   :  { %2524 = vmatpush.bf16.msra.mxu0 %v3758_v29  ;;  %v4582_v29 = vpack.c.bf16 %v2122_v46, %v2118_v17  ;;  %2551 = vmatpush.bf16.msra.mxu2 %v3894_v9  ;;  %v3735_v17 = vld [vmem:[#allocation5 + $0x8] sm:$0xf0] }
 0x124   :  { %2538 = vmatpush.bf16.msra.mxu1 %v3822_v24  ;;  %vm2107_vm3 = vcmp.gt.f32.partialorder %v1876_v48, 0.0  ;;  %v2115_v20 = vmul.f32 0.2, %v1876_v48  ;;  %v2119_v24 = vsel %vm2103_vm2, %v1874_v2, %v2111_v33  ;;  %v3762_v2 = vor.u32 %v4257_v53, %v3759_v58  ;;  %v3807_v33 = vld [vmem:[#allocation5 + $0x98] sm:$0xf0] }
 0x126   :  { %v2123_v25 = vsel %vm2107_vm3, %v1876_v48, %v2115_v20  ;;  %v4267_v20 = vld [vmem:[#allocation5 + $0x84] sm:$0xf] }
 0x127   :  { %2525 = vmatpush.bf16.msra.mxu0 %v3750_v37  ;;  %v4584_v28 = vpack.c.bf16 %v2123_v25, %v2119_v24  ;;  %v3842_v37 = vor.u32 %v4277_v35, %v3839_v34  ;;  %2552 = vmatpush.bf16.msra.mxu2 %v3886_v36  ;;  %v3738_v25 = vor.u32 %v4251_v16, %v3735_v17 }
 0x128   :  { %2539 = vmatpush.bf16.msra.mxu1 %v3814_v43  ;;  %v4275_v43 = vld [vmem:[#allocation5 + $0xc4] sm:$0xf]  ;;  %v3802_v26 = vor.u32 %v4267_v20, %v3799_v22  ;;  %v3898_v36 = vor.u32 %v4291_v30, %v3895_v32  ;;  %v3949_v20 = vld [vmem:[#allocation5 + $0x1b0] sm:$0xf]  ;;  %v4306_v22 = vld [vmem:[#allocation5 + $0x1b4] sm:$0xf0] }
 0x129   :  { %v3834_v15 = vor.u32 %v4275_v43, %v3831_v47  ;;  %v4304_v30 = vld [vmem:[#allocation5 + $0x1a4] sm:$0xf0] }
 0x12b   :  { %2526 = vmatpush.bf16.msra.mxu0 %v3742_v55  ;;  %v4273_v55 = vld [vmem:[#allocation5 + $0xb4] sm:$0xf]  ;;  %2553 = vmatpush.bf16.msra.mxu2 %v3878_v52 }
 0x12c   :  { %2540 = vmatpush.bf16.msra.mxu1 %v3806_v60  ;;  %v3826_v31 = vor.u32 %v4273_v55, %v3823_v56  ;;  %v4255_v60 = vld [vmem:[#allocation5 + $0x24] sm:$0xf]  ;;  %v3874_v56 = vor.u32 %v4285_v42, %v3871_v54  ;;  %v329_v54 = vperm.slane %v4552_v21, 3 }
 0x12d   :  { %v3754_v11 = vor.u32 %v4255_v60, %v3751_v62  ;;  %v3981_v60 = vld [vmem:[#allocation5 + $0x1f0] sm:$0xf]  ;;  %v4314_v62 = vld [vmem:[#allocation5 + $0x1f4] sm:$0xf0] }
 0x12e   :  { %v3982_v19 = vor.u32 %v4314_v62, %v3981_v60  ;;  %v4305_v60 = vld [vmem:[#allocation5 + $0x1b4] sm:$0xf]  ;;  %v3951_v62 = vld [vmem:[#allocation5 + $0x1b8] sm:$0xf0] }
 0x12f   :  { %2527 = vmatpush.bf16.msra.mxu0 %v3734_v6  ;;  %2554 = vmatpush.bf16.msra.mxu2 %v3870_v57  ;;  %v1887_v46 = vpop.f32.mrf.mxu0  ;;  %v4269_v6 = vld [vmem:[#allocation5 + $0x94] sm:$0xf]  ;;  %v4283_v57 = vld [vmem:[#allocation5 + $0x104] sm:$0xf] }
 0x130   :  { %2541 = vmatpush.bf16.msra.mxu1 %v3798_v7  ;;  %v1901_v48 = vpop.f32.mrf.mxu1  ;;  %v4295_v7 = vld [vmem:[#allocation5 + $0x164] sm:$0xf]  ;;  %v3810_v14 = vor.u32 %v4269_v6, %v3807_v33  ;;  %v1888_v24 = vadd.f32 %v1887_v46, %v328_v1  ;;  %2562 = vmatpush.bf16.msra.mxu3 %v3982_v19  ;;  %v3965_v46 = vld [vmem:[#allocation5 + $0x1d0] sm:$0xf]  ;;  %v4310_v6 = vld [vmem:[#allocation5 + $0x1d4] sm:$0xf0]  ;;  %v3954_v19 = vor.u32 %v4305_v60, %v3951_v62 }
 0x132   :  { %2528 = vmatmul.bf16.vlgmr.msra.gmra.mxu0 %v4582_v29  ;;  %v1902_v35 = vadd.f32 %v1901_v48, %v1888_v24  ;;  %v3966_v48 = vor.u32 %v4310_v6, %v3965_v46  ;;  %v3935_v46 = vld [vmem:[#allocation5 + $0x198] sm:$0xf0] }
 0x133   :  { %2576 = vmatpush.bf16.msrb.mxu0 %v3794_v8  ;;  %2542 = vmatmul.bf16.vlgmr.msra.gmra.mxu1 %v4584_v28  ;;  %v3911_v8 = vld [vmem:[#allocation5 + $0x168] sm:$0xf0] }
 0x134   :  { %2590 = vmatpush.bf16.msrb.mxu1 %v3858_v13  ;;  %2555 = vmatpush.bf16.msra.mxu2 %v3862_v61  ;;  %v3914_v13 = vor.u32 %v4295_v7, %v3911_v8 }
 0x137   :  { %2577 = vmatpush.bf16.msrb.mxu0 %v3786_v23  ;;  %v4293_v23 = vld [vmem:[#allocation5 + $0x154] sm:$0xf]  ;;  %v1915_v27 = vpop.f32.mrf.mxu2  ;;  %v1889_v34 = vpop.f32.mrf.mxu0 }
 0x138   :  { %2591 = vmatpush.bf16.msrb.mxu1 %v3850_v50  ;;  %2604 = vmatpush.bf16.msrb.mxu2 %v3922_v3  ;;  %v3906_v9 = vor.u32 %v4293_v23, %v3903_v4  ;;  %v1929_v50 = vpop.f32.mrf.mxu3  ;;  %v1916_v41 = vadd.f32 %v1915_v27, %v1902_v35  ;;  %v1890_v43 = vadd.f32 %v1889_v34, %v328_v1  ;;  %v4312_v3 = vld [vmem:[#allocation5 + $0x1e4] sm:$0xf0]  ;;  %v3933_v35 = vld [vmem:[#allocation5 + $0x190] sm:$0xf]  ;;  %v4302_v34 = vld [vmem:[#allocation5 + $0x194] sm:$0xf0] }
 0x13a   :  { %v1930_v53 = vadd.f32 %v1929_v50, %v1916_v41  ;;  %v3941_v50 = vld [vmem:[#allocation5 + $0x1a0] sm:$0xf]  ;;  %v4313_v41 = vld [vmem:[#allocation5 + $0x1f4] sm:$0xf] }
 0x13b   :  { %2578 = vmatpush.bf16.msrb.mxu0 %v3778_v39  ;;  %v1903_v39 = vpop.f32.mrf.mxu1  ;;  %v3942_v32 = vor.u32 %v4304_v30, %v3941_v50 }
 0x13c   :  { %2592 = vmatpush.bf16.msrb.mxu1 %v3842_v37  ;;  %2605 = vmatpush.bf16.msrb.mxu2 %v3914_v13  ;;  %v4289_v37 = vld [vmem:[#allocation5 + $0x134] sm:$0xf]  ;;  %v4308_v13 = vld [vmem:[#allocation5 + $0x1c4] sm:$0xf0] }
 0x13d   :  { %v3890_v47 = vor.u32 %v4289_v37, %v3887_v38  ;;  %v4300_v37 = vld [vmem:[#allocation5 + $0x184] sm:$0xf0] }
 0x13f   :  { %2579 = vmatpush.bf16.msrb.mxu0 %v3770_v10  ;;  %v1917_v52 = vpop.f32.mrf.mxu2  ;;  %v3882_v10 = vor.u32 %v4287_v49, %v3879_v51  ;;  %v4311_v49 = vld [vmem:[#allocation5 + $0x1e4] sm:$0xf]  ;;  %v3975_v51 = vld [vmem:[#allocation5 + $0x1e8] sm:$0xf0] }
 0x140   :  { %2593 = vmatpush.bf16.msrb.mxu1 %v3834_v15  ;;  %2606 = vmatpush.bf16.msrb.mxu2 %v3906_v9  ;;  %v1904_v15 = vadd.f32 %v1903_v39, %v1890_v43  ;;  %v1931_v58 = vpop.f32.mrf.mxu3  ;;  %v3925_v39 = vld [vmem:[#allocation5 + $0x180] sm:$0xf]  ;;  %v3983_v43 = vld [vmem:[#allocation5 + $0x1f8] sm:$0xf0] }
 0x141   :  { %v3926_v38 = vor.u32 %v4300_v37, %v3925_v39 }
 0x143   :  { %2580 = vmatpush.bf16.msrb.mxu0 %v3762_v2  ;;  %v1918_v2 = vadd.f32 %v1917_v52, %v1904_v15  ;;  %v3978_v52 = vor.u32 %v4311_v49, %v3975_v51  ;;  %v3967_v15 = vld [vmem:[#allocation5 + $0x1d8] sm:$0xf0] }
 0x144   :  { %2594 = vmatpush.bf16.msrb.mxu1 %v3826_v31  ;;  %2607 = vmatpush.bf16.msrb.mxu2 %v3898_v36  ;;  %v3934_v36 = vor.u32 %v4302_v34, %v3933_v35 }
 0x145   :  { %v1932_v18 = vadd.f32 %v1931_v58, %v1918_v2 }
 0x147   :  { %2581 = vmatpush.bf16.msrb.mxu0 %v3754_v11  ;;  %v3973_v11 = vld [vmem:[#allocation5 + $0x1e0] sm:$0xf] }
 0x148   :  { %2595 = vmatpush.bf16.msrb.mxu1 %v3818_v45  ;;  %2608 = vmatpush.bf16.msrb.mxu2 %v3890_v47  ;;  %v3974_v44 = vor.u32 %v4312_v3, %v3973_v11  ;;  %v3986_v47 = vor.u32 %v4313_v41, %v3983_v43 }
 0x14a   :  { %2563 = vmatpush.bf16.msra.mxu3 %v3974_v44  ;;  %v4301_v44 = vld [vmem:[#allocation5 + $0x194] sm:$0xf] }
 0x14b   :  { %2582 = vmatpush.bf16.msrb.mxu0 %v3746_v12  ;;  %v3957_v12 = vld [vmem:[#allocation5 + $0x1c0] sm:$0xf]  ;;  %v3938_v6 = vor.u32 %v4301_v44, %v3935_v46 }
 0x14c   :  { %2596 = vmatpush.bf16.msrb.mxu1 %v3810_v14  ;;  %2609 = vmatpush.bf16.msrb.mxu2 %v3882_v10  ;;  %v3958_v17 = vor.u32 %v4308_v13, %v3957_v12  ;;  %v3927_v12 = vld [vmem:[#allocation5 + $0x188] sm:$0xf0] }
 0x14e   :  { %2564 = vmatpush.bf16.msra.mxu3 %v3966_v48 }
 0x14f   :  { %2583 = vmatpush.bf16.msrb.mxu0 %v3738_v25  ;;  %v1943_v55 = vpop.f32.mrf.mxu0  ;;  %v3950_v25 = vor.u32 %v4306_v22, %v3949_v20 }
 0x150   :  { %2597 = vmatpush.bf16.msrb.mxu1 %v3802_v26  ;;  %v1944_v31 = vadd.f32 %v1943_v55, %v1930_v53  ;;  %2610 = vmatpush.bf16.msrb.mxu2 %v3874_v56  ;;  %v4309_v53 = vld [vmem:[#allocation5 + $0x1d4] sm:$0xf]  ;;  %v4307_v55 = vld [vmem:[#allocation5 + $0x1c4] sm:$0xf] }
 0x151   :  { %v3970_v42 = vor.u32 %v4309_v53, %v3967_v15 }
 0x152   :  { %2584 = vmatmul.bf16.vlgmr.msrb.gmra.mxu0 %v4582_v29  ;;  %v1957_v29 = vpop.f32.mrf.mxu1  ;;  %2565 = vmatpush.bf16.msra.mxu3 %v3958_v17 }
 0x153   :  { %2598 = vmatmul.bf16.vlgmr.msrb.gmra.mxu1 %v4584_v28  ;;  %v3863_v28 = vld [vmem:[#allocation5 + $0x108] sm:$0xf0]  ;;  %v1958_v40 = vadd.f32 %v1957_v29, %v1944_v31 }
 0x154   :  { %v3866_v59 = vor.u32 %v4283_v57, %v3863_v28  ;;  %v3959_v29 = vld [vmem:[#allocation5 + $0x1c8] sm:$0xf0] }
 0x155   :  { %v3962_v57 = vor.u32 %v4307_v55, %v3959_v29 }
 0x156   :  { %2611 = vmatpush.bf16.msrb.mxu2 %v3866_v59  ;;  %2566 = vmatpush.bf16.msra.mxu3 %v3950_v25 }
 0x157   :  { %v1971_v61 = vpop.f32.mrf.mxu2  ;;  %v1945_v0 = vpop.f32.mrf.mxu0 }
 0x158   :  { %v1985_v63 = vpop.f32.mrf.mxu3  ;;  %v1972_v45 = vadd.f32 %v1971_v61, %v1958_v40  ;;  %v1946_v5 = vadd.f32 %v1945_v0, %v1932_v18  ;;  %v4303_v61 = vld [vmem:[#allocation5 + $0x1a4] sm:$0xf]  ;;  %v3943_v0 = vld [vmem:[#allocation5 + $0x1a8] sm:$0xf0] }
 0x15a   :  { %v1959_v33 = vpop.f32.mrf.mxu1  ;;  %v1986_v7 = vadd.f32 %v1985_v63, %v1972_v45  ;;  %2567 = vmatpush.bf16.msra.mxu3 %v3942_v32  ;;  %v3946_v63 = vor.u32 %v4303_v61, %v3943_v0 }
 0x15b   :  { %v1960_v8 = vadd.f32 %v1959_v33, %v1946_v5 }
 0x15c   :  { %v2112_v23 = vmul.f32 0.2, %v1986_v7  ;;  %vm2104_vm4 = vcmp.gt.f32.partialorder %v1986_v7, 0.0 }
 0x15e   :  { %v2120_v9 = vsel %vm2104_vm4, %v1986_v7, %v2112_v23  ;;  %2568 = vmatpush.bf16.msra.mxu3 %v3934_v36 }
 0x15f   :  { %v1973_v1 = vpop.f32.mrf.mxu2 }
 0x160   :  { %v1974_v14 = vadd.f32 %v1973_v1, %v1960_v8  ;;  %v1987_v16 = vpop.f32.mrf.mxu3  ;;  %v4299_v1 = vld [vmem:[#allocation5 + $0x184] sm:$0xf] }
 0x161   :  { %v3930_v13 = vor.u32 %v4299_v1, %v3927_v12 }
 0x162   :  { %v1988_v4 = vadd.f32 %v1987_v16, %v1974_v14  ;;  %2569 = vmatpush.bf16.msra.mxu3 %v3926_v38 }
 0x164   :  { %vm2108_vm5 = vcmp.gt.f32.partialorder %v1988_v4, 0.0  ;;  %v2116_v24 = vmul.f32 0.2, %v1988_v4 }
 0x166   :  { %v2124_v26 = vsel %vm2108_vm5, %v1988_v4, %v2116_v24  ;;  %2618 = vmatpush.bf16.msrb.mxu3 %v3986_v47  ;;  %v2194_v47 = vld [vmem:[%s4608_s4] sm:$0x3] }
 0x167   :  { %v2128_v27 = vpack.c.bf16 %v2124_v26, %v2120_v9 }
 0x169   :  { %2556 = vmatmul.bf16.vlgmr.msra.gmra.mxu2 %v2128_v27 }
 0x16a   :  { %2619 = vmatpush.bf16.msrb.mxu3 %v3978_v52  ;;  %v2196_v52 = vperm.slane %v2194_v47, 0 }
 0x16e   :  { %2620 = vmatpush.bf16.msrb.mxu3 %v3970_v42 }
 0x16f   :  { %v1999_v10 = vpop.f32.mrf.mxu0 }
 0x170   :  { %v2013_v58 = vpop.f32.mrf.mxu1  ;;  %v2000_v2 = vadd.f32 %v1999_v10, %v329_v54 }
 0x172   :  { %2621 = vmatpush.bf16.msrb.mxu3 %v3962_v57  ;;  %v2014_v59 = vadd.f32 %v2013_v58, %v2000_v2  ;;  %v2197_v58 = vperm.slane %v2194_v47, 1 }
 0x176   :  { %2622 = vmatpush.bf16.msrb.mxu3 %v3954_v19 }
 0x177   :  { %v2027_v56 = vpop.f32.mrf.mxu2  ;;  %v2001_v28 = vpop.f32.mrf.mxu0 }
 0x178   :  { %v2041_v31 = vpop.f32.mrf.mxu3  ;;  %v2015_v18 = vpop.f32.mrf.mxu1  ;;  %v2002_v40 = vadd.f32 %v2001_v28, %v329_v54  ;;  %v2028_v21 = vadd.f32 %v2027_v56, %v2014_v59 }
 0x179   :  { %2612 = vmatmul.bf16.vlgmr.msrb.gmra.mxu2 %v2128_v27 }
 0x17a   :  { %2623 = vmatpush.bf16.msrb.mxu3 %v3946_v63  ;;  %v2016_v3 = vadd.f32 %v2015_v18, %v2002_v40  ;;  %v2042_v33 = vadd.f32 %v2041_v31, %v2028_v21  ;;  %v2644_v18 = vld [vmem:[%s4609_s5] sm:$0x3] }
 0x17b   :  { %v2646_v21 = vperm.slane %v2644_v18, 0 }
 0x17e   :  { %2624 = vmatpush.bf16.msrb.mxu3 %v3938_v6 }
 0x17f   :  { %v2029_v11 = vpop.f32.mrf.mxu2 }
 0x180   :  { %v2043_v45 = vpop.f32.mrf.mxu3  ;;  %v2030_v7 = vadd.f32 %v2029_v11, %v2016_v3  ;;  %v2647_v11 = vperm.slane %v2644_v18, 1 }
 0x182   :  { %2625 = vmatpush.bf16.msrb.mxu3 %v3930_v13  ;;  %v2044_v16 = vadd.f32 %v2043_v45, %v2030_v7 }
 0x18f   :  { %v2055_v5 = vpop.f32.mrf.mxu0 }
 0x190   :  { %v2069_v48 = vpop.f32.mrf.mxu1  ;;  %v2056_v8 = vadd.f32 %v2055_v5, %v2042_v33 }
 0x192   :  { %v2070_v17 = vadd.f32 %v2069_v48, %v2056_v8 }
 0x197   :  { %v2083_v14 = vpop.f32.mrf.mxu2  ;;  %v2057_v22 = vpop.f32.mrf.mxu0 }
 0x198   :  { %v2097_v20 = vpop.f32.mrf.mxu3  ;;  %v2084_v23 = vadd.f32 %v2083_v14, %v2070_v17  ;;  %v2058_v4 = vadd.f32 %v2057_v22, %v2044_v16  ;;  %v2071_v24 = vpop.f32.mrf.mxu1 }
 0x19a   :  { %v2098_v25 = vadd.f32 %v2097_v20, %v2084_v23  ;;  %v2072_v9 = vadd.f32 %v2071_v24, %v2058_v4  ;;  %v4321_v24 = vld [vmem:[#allocation2] ss:$0 sm:$0xff] }
 0x19c   :  { %v2113_v30 = vmul.f32 0.2, %v2098_v25  ;;  %vm2105_vm6 = vcmp.gt.f32.partialorder %v2098_v25, 0.0 }
 0x19e   :  { %v2121_v34 = vsel %vm2105_vm6, %v2098_v25, %v2113_v30 }
 0x19f   :  { %v2085_v26 = vpop.f32.mrf.mxu2 }
 0x1a0   :  { %v2086_v27 = vadd.f32 %v2085_v26, %v2072_v9  ;;  %v2099_v50 = vpop.f32.mrf.mxu3 }
 0x1a2   :  { %v2100_v32 = vadd.f32 %v2099_v50, %v2086_v27 }
 0x1a4   :  { %vm2109_vm7 = vcmp.gt.f32.partialorder %v2100_v32, 0.0  ;;  %v2117_v35 = vmul.f32 0.2, %v2100_v32 }
 0x1a6   :  { %v2125_v36 = vsel %vm2109_vm7, %v2100_v32, %v2117_v35 }
 0x1a7   :  { %v2129_v39 = vpack.c.bf16 %v2125_v36, %v2121_v34 }
 0x1a9   :  { %2570 = vmatmul.bf16.vlgmr.msra.gmra.mxu3 %v2129_v39 }
 0x1af   :  { %v2529_v37 = vpop.f32.mrf.mxu0 }
 0x1b0   :  { %v2543_v41 = vpop.f32.mrf.mxu1  ;;  %v2530_v15 = vadd.f32 %v2529_v37, %v2196_v52 }
 0x1b2   :  { %v2544_v42 = vadd.f32 %v2543_v41, %v2530_v15 }
 0x1b7   :  { %v2531_v43 = vpop.f32.mrf.mxu0 }
 0x1b8   :  { %v2545_v10 = vpop.f32.mrf.mxu1  ;;  %v2532_v31 = vadd.f32 %v2531_v43, %v2196_v52 }
 0x1b9   :  { %2626 = vmatmul.bf16.vlgmr.msrb.gmra.mxu3 %v2129_v39 }
 0x1ba   :  { %v2546_v62 = vadd.f32 %v2545_v10, %v2532_v31 }
 0x1cf   :  { %v2585_v53 = vpop.f32.mrf.mxu0 }
 0x1d0   :  { %v2586_v55 = vadd.f32 %v2585_v53, %v2197_v58  ;;  %v2599_v56 = vpop.f32.mrf.mxu1 }
 0x1d2   :  { %v2600_v28 = vadd.f32 %v2599_v56, %v2586_v55 }
 0x1d7   :  { %v2587_v60 = vpop.f32.mrf.mxu0 }
 0x1d8   :  { %v2588_v61 = vadd.f32 %v2587_v60, %v2197_v58  ;;  %v2601_v44 = vpop.f32.mrf.mxu1 }
 0x1da   :  { %v2602_v6 = vadd.f32 %v2601_v44, %v2588_v61 }
 0x1ec   :  { %v2557_v38 = vpop.f32.mrf.mxu2 }
 0x1ed   :  { %v2558_v29 = vadd.f32 %v2557_v38, %v2544_v42 }
 0x1f4   :  { %v2559_v49 = vpop.f32.mrf.mxu2 }
 0x1f5   :  { %v2560_v0 = vadd.f32 %v2559_v49, %v2546_v62 }
 0x1fc   :  { %v2613_v57 = vpop.f32.mrf.mxu2 }
 0x1fd   :  { %v2614_v19 = vadd.f32 %v2613_v57, %v2600_v28 }
 0x204   :  { %v2615_v46 = vpop.f32.mrf.mxu2 }
 0x205   :  { %v2616_v8 = vadd.f32 %v2615_v46, %v2602_v6 }
 0x22c   :  { %v2571_v51 = vpop.f32.mrf.mxu3 }
 0x22d   :  { %v2572_v2 = vadd.f32 %v2571_v51, %v2558_v29 }
 0x22f   :  { %v2636_v59 = vmul.f32 0.2, %v2572_v2  ;;  %vm2632_vm8 = vcmp.gt.f32.partialorder %v2572_v2, 0.0 }
 0x231   :  { %v2640_v5 = vsel %vm2632_vm8, %v2572_v2, %v2636_v59 }
 0x232   :  { %v2650_v48 = vmul.f32 %v2646_v21, %v2640_v5 }
 0x234   :  { %v2573_v54 = vpop.f32.mrf.mxu3 }
 0x235   :  { %v2574_v3 = vadd.f32 %v2573_v54, %v2560_v0 }
 0x237   :  { %v2638_v1 = vmul.f32 0.2, %v2574_v3  ;;  %vm2634_vm10 = vcmp.gt.f32.partialorder %v2574_v3, 0.0 }
 0x239   :  { %v2642_v17 = vsel %vm2634_vm10, %v2574_v3, %v2638_v1 }
 0x23a   :  { %v2652_v22 = vmul.f32 %v2646_v21, %v2642_v17 }
 0x23c   :  { %v2627_v40 = vpop.f32.mrf.mxu3 }
 0x23d   :  { %v2628_v63 = vadd.f32 %v2627_v40, %v2614_v19 }
 0x23f   :  { %vm2633_vm9 = vcmp.gt.f32.partialorder %v2628_v63, 0.0  ;;  %v2637_v45 = vmul.f32 0.2, %v2628_v63 }
 0x241   :  { %v2641_v33 = vsel %vm2633_vm9, %v2628_v63, %v2637_v45 }
 0x242   :  { %v2651_v7 = vmul.f32 %v2647_v11, %v2641_v33 }
 0x244   :  { %v2629_v12 = vpop.f32.mrf.mxu3  ;;  %v2654_v13 = vadd.f32 %v2651_v7, %v2650_v48 }
 0x245   :  { %v2630_v14 = vadd.f32 %v2629_v12, %v2616_v8 }
 0x246   :  { %2655 = vadd.xlane.f32.xlu0 %v2654_v13 }
 0x247   :  { %vm2635_vm11 = vcmp.gt.f32.partialorder %v2630_v14, 0.0  ;;  %v2639_v16 = vmul.f32 0.2, %v2630_v14 }
 0x249   :  { %v2643_v20 = vsel %vm2635_vm11, %v2630_v14, %v2639_v16 }
 0x24a   :  { %v2653_v23 = vmul.f32 %v2647_v11, %v2643_v20 }
 0x24c   :  { %v2657_v4 = vadd.f32 %v2653_v23, %v2652_v22 }
 0x24e   :  { %2658 = vadd.xlane.f32.xlu0 %v2657_v4 }
 0x2b9   :  { %v2656_v25 = vpop.xlane.xlu0 %2655 }
 0x2ba   :  { %v2664_v9 = vadd.f32 %v4321_v24, %v2656_v25 }
 0x2bc   :  { %2667 = vst.msk [vmem:[%s4611_s7] sm:$0xff] %vm2666_vm12, %v2664_v9 }
 0x2c1   :  { %v2659_v26 = vpop.xlane.xlu0 %2658 }
 0x2c2   :  { %v2665_v27 = vadd.f32 %v4321_v24, %v2659_v26 }
 0x2c4   :  { %2668 = vst.msk [vmem:[%s4611_s7 + $0x8] sm:$0xff] %vm2666_vm12, %v2665_v27 }
 0x2c5   :  { %2673 = vsyncpa [#allocation4], 1 }
 0x2c6   :  { %2674 = vsyncpa [#allocation6], 1 }

</bundles_post_ra>
